<compile_context>
chip_gen: v6e
topology: v6e:2x2x1
jax: 0.10.0
libtpu: 0.0.40
codegen_flags: <defaults>
</compile_context>

<pallas_src>
import functools

import jax
import jax.numpy as jnp
from jax.experimental import pallas as pl
from jax.experimental.pallas import tpu as pltpu

_LANES = 128
_SUBLANES = 8


def _round_up(x, m):
    return (x + m - 1) // m * m


def _num_tensorcores():
    # Best-effort query of TensorCores per device (2 on v7x, 1 on v5e/v6e).
    try:
        return int(getattr(jax.devices()[0], "num_cores", 1) or 1)
    except Exception:
        return 1


def _pick_batch_tile(batch, block_b, num_cores):
    block_b = max(_round_up(block_b, _SUBLANES), _SUBLANES)
    b8 = _round_up(batch, _SUBLANES)
    if num_cores > 1 and b8 > _SUBLANES:
        # Keep >= num_cores grid steps so the "parallel" batch axis can shard
        # across both TensorCores (v7x); on 1-TC chips a single fat tile wins.
        per_core = _round_up(pl.cdiv(b8, num_cores), _SUBLANES)
        return min(block_b, per_core)
    return min(block_b, b8)


def _mlp_kernel(x_ref, w1_ref, b1_ref, w2_ref, b2_ref, w3_ref, b3_ref, o_ref):
    # In-kernel bf16 cast of the activation tile (avoids a separate XLA cast
    # pass and its extra HBM round-trip); MXU accumulates in f32.
    x = x_ref[...].astype(jnp.bfloat16)
    # fc1 + ReLU
    h1 = jnp.dot(x, w1_ref[...], preferred_element_type=jnp.float32)
    h1 = jnp.maximum(h1 + b1_ref[...], 0.0)
    # fc2 + ReLU
    h2 = jnp.dot(h1.astype(jnp.bfloat16), w2_ref[...],
                 preferred_element_type=jnp.float32)
    h2 = jnp.maximum(h2 + b2_ref[...], 0.0)
    # fc3 (logits; columns padded to a multiple of 128 -> unmasked lane-dense store)
    out = jnp.dot(h2.astype(jnp.bfloat16), w3_ref[...],
                  preferred_element_type=jnp.float32)
    o_ref[...] = (out + b3_ref[...]).astype(o_ref.dtype)


def prepare_params(w1, b1, w2, b2, w3, b3):
    """One-time parameter prep, OUTSIDE the hot path.

    Weights are [in_features, out_features] (transpose of PyTorch nn.Linear
    storage); biases may be (N,) or (1, N).  Casts weights to bf16, biases to
    f32, and zero-pads the classifier to a multiple of 128 output lanes.
    """
    as_row = lambda b: jnp.reshape(b, (1, -1))
    C = w3.shape[1]
    Cp = _round_up(C, _LANES)
    w3p = jnp.pad(w3, ((0, 0), (0, Cp - C)))
    b3p = jnp.pad(as_row(b3), ((0, 0), (0, Cp - C)))
    return (w1.astype(jnp.bfloat16), as_row(b1).astype(jnp.float32),
            w2.astype(jnp.bfloat16), as_row(b2).astype(jnp.float32),
            w3p.astype(jnp.bfloat16), b3p.astype(jnp.float32))


@functools.partial(jax.jit, static_argnames=("block_b",))
def embedding_classifier_forward_padded(x, params, *, block_b=1024):
    """Hot-path entry point: returns lane-padded f32 logits (B, round_up(C, 128))."""
    w1b, b1f, w2b, b2f, w3b, b3f = params
    B, E = x.shape
    Cp = w3b.shape[1]

    bb = _pick_batch_tile(B, block_b, _num_tensorcores())
    Bp = _round_up(B, bb)
    if Bp != B:
        x = jnp.pad(x, ((0, Bp - B), (0, 0)))
    grid = (Bp // bb,)

    # Constant index map -> parameters stay VMEM-resident across the batch grid.
    resident = lambda a: pl.BlockSpec(a.shape, lambda i: (0, 0))

    # Scoped-VMEM estimate: double-buffered x tile (lane-padded) + f32 out tile
    # + params (2 pipeline buffers each).  Raise the limit only when a very
    # large batch tile would exceed v5e's 16 MiB default.
    param_bytes = sum(int(a.size) * a.dtype.itemsize
                      for a in (w1b, b1f, w2b, b2f, w3b, b3f))
    vmem_need = (2 * bb * _round_up(E, _LANES) * 4
                 + 2 * bb * Cp * 4
                 + 2 * param_bytes)
    cp_kwargs = dict(dimension_semantics=("parallel",))
    if vmem_need > (12 << 20):
        cp_kwargs["vmem_limit_bytes"] = int(min(vmem_need + (8 << 20), 64 << 20))

    out = pl.pallas_call(
        _mlp_kernel,
        out_shape=jax.ShapeDtypeStruct((Bp, Cp), jnp.float32),
        grid_spec=pltpu.PrefetchScalarGridSpec(
            num_scalar_prefetch=0,
            grid=grid,
            in_specs=[
                pl.BlockSpec((bb, E), lambda i: (i, 0)),   # x tile (streamed, f32)
                resident(w1b), resident(b1f),              # fc1 params
                resident(w2b), resident(b2f),              # fc2 params
                resident(w3b), resident(b3f),              # fc3 params (padded)
            ],
            out_specs=pl.BlockSpec((bb, Cp), lambda i: (i, 0)),
        ),
        compiler_params=pltpu.CompilerParams(**cp_kwargs),
    )(x, w1b, b1f, w2b, b2f, w3b, b3f)

    if Bp != B:
        out = out[:B]
    return out


def embedding_classifier_forward(x, params, num_classes, *, block_b=1024):
    """PyTorch-parity logits (B, num_classes).

    Prefer embedding_classifier_forward_padded (and consuming the padded
    logits / fusing argmax downstream) in performance-critical code; this
    convenience slice is one extra XLA copy.
    """
    out_padded = embedding_classifier_forward_padded(x, params, block_b=block_b)
    return out_padded[:, :num_classes]


def init_params(key, embedding_dim, num_classes):
    # Deterministic synthetic init mirroring the nn.Linear layers
    # (weights stored [in, out]; biases (N,) like PyTorch).
    ks = jax.random.split(key, 6)
    w1 = jax.random.normal(ks[0], (embedding_dim, 256), jnp.float32) * 0.05
    b1 = jax.random.normal(ks[1], (256,), jnp.float32) * 0.05
    w2 = jax.random.normal(ks[2], (256, 128), jnp.float32) * 0.05
    b2 = jax.random.normal(ks[3], (128,), jnp.float32) * 0.05
    w3 = jax.random.normal(ks[4], (128, num_classes), jnp.float32) * 0.05
    b3 = jax.random.normal(ks[5], (num_classes,), jnp.float32) * 0.05
    return w1, b1, w2, b2, w3, b3


if __name__ == "__main__":
    embedding_dim = 32
    num_classes = 10
    batch = 512

    key = jax.random.PRNGKey(0)
    kx, kp = jax.random.split(key)
    x = jax.random.normal(kx, (batch, embedding_dim), jnp.float32)
    w1, b1, w2, b2, w3, b3 = init_params(kp, embedding_dim, num_classes)

    # One-time parameter prep (bf16 cast + 128-lane padding) outside the hot path.
    params = prepare_params(w1, b1, w2, b2, w3, b3)

    out = embedding_classifier_forward(x, params, num_classes)
    out = jax.block_until_ready(out)

    # Pure-JAX f32 reference; kernel uses bf16 operands with f32 MXU
    # accumulation, so tolerances are loosened accordingly.
    h = jnp.maximum(x @ w1 + b1[None, :], 0.0)
    h = jnp.maximum(h @ w2 + b2[None, :], 0.0)
    ref = h @ w3 + b3[None, :]

    assert out.shape == (batch, num_classes)
    assert out.dtype == jnp.float32
    assert jnp.allclose(out, ref, atol=3e-2, rtol=3e-2), (
        float(jnp.max(jnp.abs(out - ref))))

    print("KERNEL_OK")
</pallas_src>

<mosaic_0001>
module attributes {stable_mosaic.version = 11 : i64} {
  func.func @_mlp_kernel(%arg0: i32, %arg1: memref<512x32xf32, #tpu.memory_space<vmem>>, %arg2: memref<32x256xbf16, #tpu.memory_space<vmem>>, %arg3: memref<1x256xf32, #tpu.memory_space<vmem>>, %arg4: memref<256x128xbf16, #tpu.memory_space<vmem>>, %arg5: memref<1x128xf32, #tpu.memory_space<vmem>>, %arg6: memref<128x128xbf16, #tpu.memory_space<vmem>>, %arg7: memref<1x128xf32, #tpu.memory_space<vmem>>, %arg8: memref<512x128xf32, #tpu.memory_space<vmem>>) attributes {dimension_semantics = [#tpu.dimension_semantics<parallel>], iteration_bounds = array<i64: 1>, scalar_prefetch = 0 : i64, scratch_operands = 0 : i64, tpu.core_type = #tpu.core_type<tc>, window_params = [{transform_indices = @transform_0, window_bounds = array<i64: 512, 32>}, {pipeline_mode = #tpu.pipeline_mode<synchronous>, transform_indices = @transform_1, window_bounds = array<i64: 32, 256>}, {pipeline_mode = #tpu.pipeline_mode<synchronous>, transform_indices = @transform_2, window_bounds = array<i64: 1, 256>}, {pipeline_mode = #tpu.pipeline_mode<synchronous>, transform_indices = @transform_3, window_bounds = array<i64: 256, 128>}, {pipeline_mode = #tpu.pipeline_mode<synchronous>, transform_indices = @transform_4, window_bounds = array<i64: 1, 128>}, {pipeline_mode = #tpu.pipeline_mode<synchronous>, transform_indices = @transform_5, window_bounds = array<i64: 128, 128>}, {pipeline_mode = #tpu.pipeline_mode<synchronous>, transform_indices = @transform_6, window_bounds = array<i64: 1, 128>}, {transform_indices = @transform_7, window_bounds = array<i64: 512, 128>}]} {
    %c0 = arith.constant 0 : index
    %c0_0 = arith.constant 0 : index
    %0 = vector.load %arg1[%c0, %c0_0] : memref<512x32xf32, #tpu.memory_space<vmem>>, vector<512x32xf32>
    %1 = arith.truncf %0 : vector<512x32xf32> to vector<512x32xbf16>
    %c0_1 = arith.constant 0 : index
    %c0_2 = arith.constant 0 : index
    %2 = vector.load %arg2[%c0_1, %c0_2] : memref<32x256xbf16, #tpu.memory_space<vmem>>, vector<32x256xbf16>
    %cst = arith.constant dense<0.000000e+00> : vector<512x256xf32>
    %3 = tpu.matmul %1, %2, %cst {dimension_numbers = #tpu.dot_dimension_numbers<[1], [0], [0], [1], [0, 0, 1, 1], [], []>} : vector<512x32xbf16>, vector<32x256xbf16>, vector<512x256xf32> -> vector<512x256xf32>
    %c0_3 = arith.constant 0 : index
    %c0_4 = arith.constant 0 : index
    %4 = vector.load %arg3[%c0_3, %c0_4] : memref<1x256xf32, #tpu.memory_space<vmem>>, vector<1x256xf32>
    %5 = vector.broadcast %4 : vector<1x256xf32> to vector<512x256xf32>
    %6 = arith.addf %3, %5 : vector<512x256xf32>
    %cst_5 = arith.constant 0.000000e+00 : f32
    %7 = vector.broadcast %cst_5 : f32 to vector<512x256xf32>
    %8 = arith.maximumf %6, %7 : vector<512x256xf32>
    %9 = arith.truncf %8 : vector<512x256xf32> to vector<512x256xbf16>
    %c0_6 = arith.constant 0 : index
    %c0_7 = arith.constant 0 : index
    %10 = vector.load %arg4[%c0_6, %c0_7] : memref<256x128xbf16, #tpu.memory_space<vmem>>, vector<256x128xbf16>
    %cst_8 = arith.constant dense<0.000000e+00> : vector<512x128xf32>
    %11 = tpu.matmul %9, %10, %cst_8 {dimension_numbers = #tpu.dot_dimension_numbers<[1], [0], [0], [1], [0, 0, 1, 1], [], []>} : vector<512x256xbf16>, vector<256x128xbf16>, vector<512x128xf32> -> vector<512x128xf32>
    %c0_9 = arith.constant 0 : index
    %c0_10 = arith.constant 0 : index
    %12 = vector.load %arg5[%c0_9, %c0_10] : memref<1x128xf32, #tpu.memory_space<vmem>>, vector<1x128xf32>
    %13 = vector.broadcast %12 : vector<1x128xf32> to vector<512x128xf32>
    %14 = arith.addf %11, %13 : vector<512x128xf32>
    %cst_11 = arith.constant 0.000000e+00 : f32
    %15 = vector.broadcast %cst_11 : f32 to vector<512x128xf32>
    %16 = arith.maximumf %14, %15 : vector<512x128xf32>
    %17 = arith.truncf %16 : vector<512x128xf32> to vector<512x128xbf16>
    %c0_12 = arith.constant 0 : index
    %c0_13 = arith.constant 0 : index
    %18 = vector.load %arg6[%c0_12, %c0_13] : memref<128x128xbf16, #tpu.memory_space<vmem>>, vector<128x128xbf16>
    %cst_14 = arith.constant dense<0.000000e+00> : vector<512x128xf32>
    %19 = tpu.matmul %17, %18, %cst_14 {dimension_numbers = #tpu.dot_dimension_numbers<[1], [0], [0], [1], [0, 0, 1, 1], [], []>} : vector<512x128xbf16>, vector<128x128xbf16>, vector<512x128xf32> -> vector<512x128xf32>
    %c0_15 = arith.constant 0 : index
    %c0_16 = arith.constant 0 : index
    %20 = vector.load %arg7[%c0_15, %c0_16] : memref<1x128xf32, #tpu.memory_space<vmem>>, vector<1x128xf32>
    %21 = vector.broadcast %20 : vector<1x128xf32> to vector<512x128xf32>
    %22 = arith.addf %19, %21 : vector<512x128xf32>
    %c0_17 = arith.constant 0 : index
    %c0_18 = arith.constant 0 : index
    %23 = vector.load %arg8[%c0_17, %c0_18] : memref<512x128xf32, #tpu.memory_space<vmem>>, vector<512x128xf32>
    tpu.vector_store %arg8[%c0_17, %c0_18], %22 {strides = array<i32>} : memref<512x128xf32, #tpu.memory_space<vmem>>, vector<512x128xf32>,
    return
  }
  func.func @transform_0(%arg0: i32) -> (i32, i32) {
    %c0_i32 = arith.constant 0 : i32
    %c0_i32_0 = arith.constant 0 : i32
    return %arg0, %c0_i32 : i32, i32
  }
  func.func @transform_1(%arg0: i32) -> (i32, i32) {
    %c0_i32 = arith.constant 0 : i32
    %c0_i32_0 = arith.constant 0 : i32
    %c0_i32_1 = arith.constant 0 : i32
    return %c0_i32, %c0_i32_0 : i32, i32
  }
  func.func @transform_2(%arg0: i32) -> (i32, i32) {
    %c0_i32 = arith.constant 0 : i32
    %c0_i32_0 = arith.constant 0 : i32
    %c0_i32_1 = arith.constant 0 : i32
    return %c0_i32, %c0_i32_0 : i32, i32
  }
  func.func @transform_3(%arg0: i32) -> (i32, i32) {
    %c0_i32 = arith.constant 0 : i32
    %c0_i32_0 = arith.constant 0 : i32
    %c0_i32_1 = arith.constant 0 : i32
    return %c0_i32, %c0_i32_0 : i32, i32
  }
  func.func @transform_4(%arg0: i32) -> (i32, i32) {
    %c0_i32 = arith.constant 0 : i32
    %c0_i32_0 = arith.constant 0 : i32
    %c0_i32_1 = arith.constant 0 : i32
    return %c0_i32, %c0_i32_0 : i32, i32
  }
  func.func @transform_5(%arg0: i32) -> (i32, i32) {
    %c0_i32 = arith.constant 0 : i32
    %c0_i32_0 = arith.constant 0 : i32
    %c0_i32_1 = arith.constant 0 : i32
    return %c0_i32, %c0_i32_0 : i32, i32
  }
  func.func @transform_6(%arg0: i32) -> (i32, i32) {
    %c0_i32 = arith.constant 0 : i32
    %c0_i32_0 = arith.constant 0 : i32
    %c0_i32_1 = arith.constant 0 : i32
    return %c0_i32, %c0_i32_0 : i32, i32
  }
  func.func @transform_7(%arg0: i32) -> (i32, i32) {
    %c0_i32 = arith.constant 0 : i32
    %c0_i32_0 = arith.constant 0 : i32
    return %arg0, %c0_i32 : i32, i32
  }
}

</mosaic_0001>

<bundles_post_ra>
// kernel: embedding_classifier_forward_padded.1
= control target key start
LH: loop header
LB: loop body
LE: loop exit
PB: predicated region body
PF: predicated region fallthrough
CT: control target
= control target key end

     0   :  { %v2004_v2 = vmov 0   ;;  %vm160_vm0 = vcmask 261120   ;;  %s2776_s0 = inlined_call_operand.vmem [shape: f32[512,32], index: 0, kind: input, shape index: {}]   ;;  %s2777_s1 = inlined_call_operand.vmem [shape: bf16[32,256], index: 1, kind: input, shape index: {}]   ;;  %s2778_s2 = inlined_call_operand.vmem [shape: f32[1,256], index: 2, kind: input, shape index: {}]   ;;  %s2779_s3 = inlined_call_operand.vmem [shape: bf16[256,128], index: 3, kind: input, shape index: {}]   ;;  %s2780_s4 = inlined_call_operand.vmem [shape: f32[1,128], index: 4, kind: input, shape index: {}]   ;;  %s2781_s5 = inlined_call_operand.vmem [shape: bf16[128,128], index: 5, kind: input, shape index: {}]   ;;  %s2782_s6 = inlined_call_operand.vmem [shape: f32[1,128], index: 6, kind: input, shape index: {}]   ;;  %s2783_s7 = inlined_call_operand.hbm [shape: f32[512,128], index: 7, kind: output, shape index: {}]  }
   0x1   :  { %v1952_v0 = vld [vmem:[%s2777_s1 + $0x14] ss:$8 sps:$4 sm:$0xff]   ;;  %v1954_v1 = vld [vmem:[%s2777_s1 + $0x10] ss:$8 sps:$4 sm:$0xff]   ;;  %289 = vmatprep.mubr.bf16.mxu0 %v2004_v2  ;;  %529 = vmatprep.mubr.bf16.mxu1 %v2004_v2  ;;  %v1955_v3 = vld [vmem:[%s2777_s1 + $0x4] ss:$8 sps:$4 sm:$0xff]  }
   0x2   :  { %269 = vmatprep.subr.bf16.mxu0 %v1952_v0  ;;  %1944 = vmatprep.subr.bf16.mxu1 %v1952_v0  ;;  %v1957_v4 = vld [vmem:[%s2777_s1] ss:$8 sps:$4 sm:$0xff]   ;;  %v30_v8 = vld [vmem:[%s2776_s0 + $0x10] sm:$0xff]  ;;  %v31_v9 = vld [vmem:[%s2776_s0 + $0x18] sm:$0xff] }
   0x3   :  { %270 = vmatpush1.bf16.msra.mxu0 %v1954_v1  ;;  %v28_v5 = vld [vmem:[%s2776_s0] sm:$0xff]  ;;  %v29_v6 = vld [vmem:[%s2776_s0 + $0x8] sm:$0xff]  ;;  %1946 = vmatpush1.bf16.msra.mxu1 %v1954_v1  ;;  %v93_v10 = vpack.c.bf16 %v31_v9, %v30_v8  ;;  %v1958_v14 = vld [vmem:[%s2779_s3 + $0x38] sm:$0xff]  }
   0x4   :  { %271 = vmatprep.subr.bf16.mxu0 %v1955_v3  ;;  %1945 = vmatprep.subr.bf16.mxu1 %v1955_v3  ;;  %v92_v7 = vpack.c.bf16 %v29_v6, %v28_v5  ;;  %v76_v11 = vld [vmem:[%s2776_s0 + $0x180] sm:$0xff]  ;;  %v77_v12 = vld [vmem:[%s2776_s0 + $0x188] sm:$0xff]  ;;  %v78_v18 = vld [vmem:[%s2776_s0 + $0x190] sm:$0xff] }
   0x5   :  { %v116_v13 = vpack.c.bf16 %v77_v12, %v76_v11  ;;  %v32_v15 = vld [vmem:[%s2776_s0 + $0x20] sm:$0xff]  ;;  %v33_v16 = vld [vmem:[%s2776_s0 + $0x28] sm:$0xff]  ;;  %v79_v19 = vld [vmem:[%s2776_s0 + $0x198] sm:$0xff] }
   0x6   :  { %v94_v17 = vpack.c.bf16 %v33_v16, %v32_v15  ;;  %v117_v20 = vpack.c.bf16 %v79_v19, %v78_v18  ;;  %v34_v21 = vld [vmem:[%s2776_s0 + $0x30] sm:$0xff]  ;;  %v35_v23 = vld [vmem:[%s2776_s0 + $0x38] sm:$0xff]  ;;  %v1960_v24 = vld [vmem:[%s2779_s3 + $0x28] sm:$0xff]  }
   0x7   :  { %272 = vmatpush1.bf16.msra.mxu0 %v1957_v4  ;;  %1947 = vmatpush1.bf16.msra.mxu1 %v1957_v4  ;;  %v1959_v22 = vld [vmem:[%s2779_s3 + $0x30] sm:$0xff]   ;;  %v95_v25 = vpack.c.bf16 %v35_v23, %v34_v21  ;;  %v80_v26 = vld [vmem:[%s2776_s0 + $0x1a0] sm:$0xff]  ;;  %v81_v27 = vld [vmem:[%s2776_s0 + $0x1a8] sm:$0xff] }
   0x8   :  { %937 = vmatprep.subr.bf16.mxu1 %v2004_v2  ;;  %v118_v28 = vpack.c.bf16 %v81_v27, %v80_v26  ;;  %v1961_v29 = vld [vmem:[%s2779_s3 + $0x20] sm:$0xff]   ;;  %v37_v31 = vld [vmem:[%s2776_s0 + $0x48] sm:$0xff]  ;;  %v1962_v32 = vld [vmem:[%s2779_s3 + $0x18] sm:$0xff]  }
   0x9   :  { %v36_v30 = vld [vmem:[%s2776_s0 + $0x40] sm:$0xff] }
   0xa   :  { %1766 = vmatmul.mubr.msk.bf16.vlgmr.msra.gmra.mxu0 %vm160_vm0, %v92_v7  ;;  %1790 = vmatmul.mubr.msk.bf16.vlgmr.msra.gmra.mxu1 %vm160_vm0, %v116_v13 }
   0xb   :  { %299 = vmatprep.mubr.bf16.mxu0 %v2004_v2  ;;  %539 = vmatprep.mubr.bf16.mxu1 %v2004_v2 }
   0xc   :  { %938 = vmatpush1.bf16.msra.mxu1 %v1958_v14 }
   0xd   :  { %939 = vmatprep.subr.bf16.mxu1 %v2004_v2 }
  0x10   :  { %940 = vmatpush1.bf16.msra.mxu1 %v1959_v22 }
  0x11   :  { %941 = vmatprep.subr.bf16.mxu1 %v2004_v2 }
  0x12   :  { %1767 = vmatmul.mubr.msk.bf16.gmra.mxu0 %vm160_vm0, %v93_v10  ;;  %1791 = vmatmul.mubr.msk.bf16.gmra.mxu1 %vm160_vm0, %v117_v20 }
  0x13   :  { %309 = vmatprep.mubr.bf16.mxu0 %v2004_v2  ;;  %549 = vmatprep.mubr.bf16.mxu1 %v2004_v2 }
  0x14   :  { %942 = vmatpush1.bf16.msra.mxu1 %v1960_v24 }
  0x15   :  { %943 = vmatprep.subr.bf16.mxu1 %v2004_v2 }
  0x18   :  { %944 = vmatpush1.bf16.msra.mxu1 %v1961_v29 }
  0x1a   :  { %1768 = vmatmul.mubr.msk.bf16.gmra.mxu0 %vm160_vm0, %v94_v17  ;;  %1792 = vmatmul.mubr.msk.bf16.gmra.mxu1 %vm160_vm0, %v118_v28 }
  0x1b   :  { %319 = vmatprep.mubr.bf16.mxu0 %v2004_v2  ;;  %559 = vmatprep.mubr.bf16.mxu1 %v2004_v2 }
  0x22   :  { %1769 = vmatmul.mubr.msk.bf16.gmra.mxu0 %vm160_vm0, %v95_v25 }
  0x23   :  { %329 = vmatprep.mubr.bf16.mxu0 %v2004_v2 }
  0x24   :  { %12 = vsyncpa [#allocation3], 0  ;;  %945 = vmatprep.subr.bf16.mxu1 %v2004_v2  ;;  %v96_v33 = vpack.c.bf16 %v37_v31, %v36_v30  ;;  %v82_v34 = vld [vmem:[%s2776_s0 + $0x1b0] sm:$0xff]  ;;  %v83_v35 = vld [vmem:[%s2776_s0 + $0x1b8] sm:$0xff] }
  0x25   :  { %946 = vmatpush1.bf16.msra.mxu1 %v1962_v32  ;;  %v119_v36 = vpack.c.bf16 %v83_v35, %v82_v34  ;;  %v1963_v37 = vld [vmem:[%s2779_s3 + $0x10] sm:$0xff]   ;;  %v39_v39 = vld [vmem:[%s2776_s0 + $0x58] sm:$0xff]  ;;  %v1964_v40 = vld [vmem:[%s2779_s3 + $0x8] sm:$0xff]  }
  0x26   :  { %947 = vmatprep.subr.bf16.mxu1 %v2004_v2  ;;  %v38_v38 = vld [vmem:[%s2776_s0 + $0x50] sm:$0xff]  ;;  %v84_v42 = vld [vmem:[%s2776_s0 + $0x1c0] sm:$0xff]  ;;  %v85_v43 = vld [vmem:[%s2776_s0 + $0x1c8] sm:$0xff] }
  0x27   :  { %1793 = vmatmul.mubr.msk.bf16.gmra.mxu1 %vm160_vm0, %v119_v36  ;;  %v97_v41 = vpack.c.bf16 %v39_v39, %v38_v38  ;;  %v120_v44 = vpack.c.bf16 %v85_v43, %v84_v42  ;;  %v1965_v45 = vld [vmem:[%s2779_s3] sm:$0xff]   ;;  %v41_v47 = vld [vmem:[%s2776_s0 + $0x68] sm:$0xff]  ;;  %v1966_v48 = vld [vmem:[%s2779_s3 + $0x78] sm:$0xff]  }
  0x28   :  { %569 = vmatprep.mubr.bf16.mxu1 %v2004_v2  ;;  %v40_v46 = vld [vmem:[%s2776_s0 + $0x60] sm:$0xff]  ;;  %v86_v50 = vld [vmem:[%s2776_s0 + $0x1d0] sm:$0xff]  ;;  %v87_v51 = vld [vmem:[%s2776_s0 + $0x1d8] sm:$0xff] }
  0x29   :  { %948 = vmatpush1.bf16.msra.mxu1 %v1963_v37  ;;  %v98_v49 = vpack.c.bf16 %v41_v47, %v40_v46  ;;  %v121_v52 = vpack.c.bf16 %v87_v51, %v86_v50  ;;  %v1967_v53 = vld [vmem:[%s2779_s3 + $0x70] sm:$0xff]   ;;  %v43_v55 = vld [vmem:[%s2776_s0 + $0x78] sm:$0xff]  ;;  %v1968_v56 = vld [vmem:[%s2779_s3 + $0x68] sm:$0xff]  }
  0x2a   :  { %1770 = vmatmul.mubr.msk.bf16.gmra.mxu0 %vm160_vm0, %v96_v33  ;;  %949 = vmatprep.subr.bf16.mxu1 %v2004_v2  ;;  %v42_v54 = vld [vmem:[%s2776_s0 + $0x70] sm:$0xff]  ;;  %v88_v58 = vld [vmem:[%s2776_s0 + $0x1e0] sm:$0xff]  ;;  %v89_v59 = vld [vmem:[%s2776_s0 + $0x1e8] sm:$0xff] }
  0x2b   :  { %339 = vmatprep.mubr.bf16.mxu0 %v2004_v2  ;;  %v99_v57 = vpack.c.bf16 %v43_v55, %v42_v54  ;;  %v122_v60 = vpack.c.bf16 %v89_v59, %v88_v58  ;;  %v1969_v61 = vld [vmem:[%s2779_s3 + $0x60] sm:$0xff]   ;;  %v45_v63 = vld [vmem:[%s2776_s0 + $0x88] sm:$0xff]  ;;  %v1970_v0 = vld [vmem:[%s2779_s3 + $0x58] sm:$0xff]   ;;  %v130_v54 = vlaneseq }
  0x2c   :  { %v44_v62 = vld [vmem:[%s2776_s0 + $0x80] sm:$0xff]  ;;  %v90_v3 = vld [vmem:[%s2776_s0 + $0x1f0] sm:$0xff]  ;;  %v91_v4 = vld [vmem:[%s2776_s0 + $0x1f8] sm:$0xff] }
  0x2d   :  { %950 = vmatpush1.bf16.msra.mxu1 %v1964_v40  ;;  %v100_v1 = vpack.c.bf16 %v45_v63, %v44_v62  ;;  %v123_v5 = vpack.c.bf16 %v91_v4, %v90_v3  ;;  %v46_v6 = vld [vmem:[%s2776_s0 + $0x90] sm:$0xff]  ;;  %v47_v7 = vld [vmem:[%s2776_s0 + $0x98] sm:$0xff]  ;;  %v1972_v10 = vld [vmem:[%s2779_s3 + $0x48] sm:$0xff]   ;;  %v131_v55 = vshrl.u32 %v130_v54, 7 }
  0x2e   :  { %951 = vmatprep.subr.bf16.mxu1 %v2004_v2  ;;  %v1971_v8 = vld [vmem:[%s2779_s3 + $0x50] sm:$0xff]   ;;  %v101_v9 = vpack.c.bf16 %v47_v7, %v46_v6  ;;  %v48_v11 = vld [vmem:[%s2776_s0 + $0xa0] sm:$0xff]  ;;  %v49_v12 = vld [vmem:[%s2776_s0 + $0xa8] sm:$0xff] }
  0x2f   :  { %1794 = vmatmul.mubr.msk.bf16.gmra.mxu1 %vm160_vm0, %v120_v44  ;;  %v1973_v13 = vld [vmem:[%s2779_s3 + $0x40] sm:$0xff]   ;;  %v102_v14 = vpack.c.bf16 %v49_v12, %v48_v11  ;;  %v50_v15 = vld [vmem:[%s2776_s0 + $0xb0] sm:$0xff]  ;;  %v51_v16 = vld [vmem:[%s2776_s0 + $0xb8] sm:$0xff] }
  0x30   :  { %579 = vmatprep.mubr.bf16.mxu1 %v2004_v2  ;;  %v103_v17 = vpack.c.bf16 %v51_v16, %v50_v15  ;;  %v52_v18 = vld [vmem:[%s2776_s0 + $0xc0] sm:$0xff]  ;;  %v53_v19 = vld [vmem:[%s2776_s0 + $0xc8] sm:$0xff]  ;;  %v54_v21 = vld [vmem:[%s2776_s0 + $0xd0] sm:$0xff] }
  0x31   :  { %952 = vmatpush1.bf16.msra.mxu1 %v1965_v45  ;;  %v104_v20 = vpack.c.bf16 %v53_v19, %v52_v18  ;;  %v55_v22 = vld [vmem:[%s2776_s0 + $0xd8] sm:$0xff]  ;;  %v56_v24 = vld [vmem:[%s2776_s0 + $0xe0] sm:$0xff]  ;;  %v57_v25 = vld [vmem:[%s2776_s0 + $0xe8] sm:$0xff] }
  0x32   :  { %1771 = vmatmul.mubr.msk.bf16.gmra.mxu0 %vm160_vm0, %v97_v41  ;;  %953 = vmatprep.subr.bf16.mxu1 %v2004_v2  ;;  %v105_v23 = vpack.c.bf16 %v55_v22, %v54_v21  ;;  %v106_v26 = vpack.c.bf16 %v57_v25, %v56_v24  ;;  %v58_v27 = vld [vmem:[%s2776_s0 + $0xf0] sm:$0xff]  ;;  %v59_v28 = vld [vmem:[%s2776_s0 + $0xf8] sm:$0xff]  ;;  %v60_v30 = vld [vmem:[%s2776_s0 + $0x100] sm:$0xff] }
  0x33   :  { %349 = vmatprep.mubr.bf16.mxu0 %v2004_v2  ;;  %v107_v29 = vpack.c.bf16 %v59_v28, %v58_v27  ;;  %v61_v31 = vld [vmem:[%s2776_s0 + $0x108] sm:$0xff]  ;;  %v62_v33 = vld [vmem:[%s2776_s0 + $0x110] sm:$0xff]  ;;  %v63_v34 = vld [vmem:[%s2776_s0 + $0x118] sm:$0xff] }
  0x34   :  { %v108_v32 = vpack.c.bf16 %v61_v31, %v60_v30  ;;  %v109_v35 = vpack.c.bf16 %v63_v34, %v62_v33  ;;  %v64_v36 = vld [vmem:[%s2776_s0 + $0x120] sm:$0xff]  ;;  %v65_v37 = vld [vmem:[%s2776_s0 + $0x128] sm:$0xff]  ;;  %v66_v39 = vld [vmem:[%s2776_s0 + $0x130] sm:$0xff] }
  0x35   :  { %954 = vmatpush2.bf16.msra.mxu1 %v1966_v48  ;;  %v110_v38 = vpack.c.bf16 %v65_v37, %v64_v36  ;;  %v67_v40 = vld [vmem:[%s2776_s0 + $0x138] sm:$0xff]  ;;  %v68_v42 = vld [vmem:[%s2776_s0 + $0x140] sm:$0xff]  ;;  %v69_v43 = vld [vmem:[%s2776_s0 + $0x148] sm:$0xff] }
  0x36   :  { %955 = vmatprep.subr.bf16.mxu1 %v2004_v2  ;;  %v111_v41 = vpack.c.bf16 %v67_v40, %v66_v39  ;;  %v112_v44 = vpack.c.bf16 %v69_v43, %v68_v42  ;;  %v70_v45 = vld [vmem:[%s2776_s0 + $0x150] sm:$0xff]  ;;  %v71_v46 = vld [vmem:[%s2776_s0 + $0x158] sm:$0xff]  ;;  %v72_v48 = vld [vmem:[%s2776_s0 + $0x160] sm:$0xff] }
  0x37   :  { %1795 = vmatmul.mubr.msk.bf16.gmra.mxu1 %vm160_vm0, %v121_v52  ;;  %v113_v47 = vpack.c.bf16 %v71_v46, %v70_v45  ;;  %v74_v51 = vld [vmem:[%s2776_s0 + $0x170] sm:$0xff]  ;;  %v75_v52 = vld [vmem:[%s2776_s0 + $0x178] sm:$0xff]  ;;  %v128_v58 = vld [vmem:[%s2778_s2] sm:$0x3] }
  0x38   :  { %589 = vmatprep.mubr.bf16.mxu1 %v2004_v2  ;;  %v1974_v40 = vld [vmem:[%s2781_s5 + $0x38] sm:$0xff]  }
  0x39   :  { %956 = vmatpush2.bf16.msra.mxu1 %v1967_v53  ;;  %v115_v53 = vpack.c.bf16 %v75_v52, %v74_v51  ;;  %1864 = vmatprep.subr.bf16.mxu0 %v1974_v40 }
  0x3a   :  { %1772 = vmatmul.mubr.msk.bf16.gmra.mxu0 %vm160_vm0, %v98_v49  ;;  %957 = vmatprep.subr.bf16.mxu1 %v2004_v2  ;;  %v73_v49 = vld [vmem:[%s2776_s0 + $0x168] sm:$0xff] }
  0x3b   :  { %359 = vmatprep.mubr.bf16.mxu0 %v2004_v2  ;;  %v114_v50 = vpack.c.bf16 %v73_v49, %v72_v48  ;;  %1865 = vmatpush3.bf16.msra.mxu0 %v1974_v40 }
  0x3d   :  { %958 = vmatpush2.bf16.msra.mxu1 %v1968_v56  ;;  %v136_v56 = vsub.s32 1, %v131_v55 }
  0x3e   :  { %959 = vmatprep.subr.bf16.mxu1 %v2004_v2 }
  0x3f   :  { %1796 = vmatmul.mubr.msk.bf16.gmra.mxu1 %vm160_vm0, %v122_v60  ;;  %v2383_v59 = vrot.slane %v128_v58, %v136_v56 }
  0x40   :  { %599 = vmatprep.mubr.bf16.mxu1 %v2004_v2 }
  0x41   :  { %960 = vmatpush2.bf16.msra.mxu1 %v1969_v61 }
  0x42   :  { %1773 = vmatmul.mubr.msk.bf16.gmra.mxu0 %vm160_vm0, %v99_v57  ;;  %961 = vmatprep.subr.bf16.mxu1 %v2004_v2  ;;  %v132_v57 = vsub.s32 0, %v131_v55 }
  0x43   :  { %369 = vmatprep.mubr.bf16.mxu0 %v2004_v2 }
  0x44   :  { %v2385_v60 = vrot.slane %v128_v58, %v132_v57 }
  0x45   :  { %962 = vmatpush2.bf16.msra.mxu1 %v1970_v0 }
  0x46   :  { %963 = vmatprep.subr.bf16.mxu1 %v2004_v2 }
  0x47   :  { %1797 = vmatmul.mubr.msk.bf16.gmra.mxu1 %vm160_vm0, %v123_v5 }
  0x49   :  { %964 = vmatpush2.bf16.msra.mxu1 %v1971_v8 }
  0x4a   :  { %1774 = vmatmul.mubr.msk.bf16.gmra.mxu0 %vm160_vm0, %v100_v1  ;;  %965 = vmatprep.subr.bf16.mxu1 %v2004_v2 }
  0x4b   :  { %379 = vmatprep.mubr.bf16.mxu0 %v2004_v2 }
  0x4d   :  { %966 = vmatpush2.bf16.msra.mxu1 %v1972_v10 }
  0x4e   :  { %967 = vmatprep.subr.bf16.mxu1 %v2004_v2 }
  0x51   :  { %968 = vmatpush2.bf16.msra.mxu1 %v1973_v13 }
  0x52   :  { %1775 = vmatmul.mubr.msk.bf16.gmra.mxu0 %vm160_vm0, %v101_v9 }
  0x53   :  { %389 = vmatprep.mubr.bf16.mxu0 %v2004_v2 }
  0x5a   :  { %1776 = vmatmul.mubr.msk.bf16.gmra.mxu0 %vm160_vm0, %v102_v14 }
  0x5b   :  { %399 = vmatprep.mubr.bf16.mxu0 %v2004_v2 }
  0x62   :  { %1777 = vmatmul.mubr.msk.bf16.gmra.mxu0 %vm160_vm0, %v103_v17 }
  0x63   :  { %409 = vmatprep.mubr.bf16.mxu0 %v2004_v2 }
  0x6a   :  { %1778 = vmatmul.mubr.msk.bf16.gmra.mxu0 %vm160_vm0, %v104_v20 }
  0x6b   :  { %419 = vmatprep.mubr.bf16.mxu0 %v2004_v2 }
  0x72   :  { %1779 = vmatmul.mubr.msk.bf16.gmra.mxu0 %vm160_vm0, %v105_v23 }
  0x73   :  { %429 = vmatprep.mubr.bf16.mxu0 %v2004_v2 }
  0x7a   :  { %1780 = vmatmul.mubr.msk.bf16.gmra.mxu0 %vm160_vm0, %v106_v26 }
  0x7b   :  { %439 = vmatprep.mubr.bf16.mxu0 %v2004_v2 }
  0x82   :  { %1781 = vmatmul.mubr.msk.bf16.gmra.mxu0 %vm160_vm0, %v107_v29 }
  0x83   :  { %449 = vmatprep.mubr.bf16.mxu0 %v2004_v2 }
  0x8a   :  { %1782 = vmatmul.mubr.msk.bf16.gmra.mxu0 %vm160_vm0, %v108_v32 }
  0x8b   :  { %459 = vmatprep.mubr.bf16.mxu0 %v2004_v2 }
  0x92   :  { %1783 = vmatmul.mubr.msk.bf16.gmra.mxu0 %vm160_vm0, %v109_v35 }
  0x93   :  { %469 = vmatprep.mubr.bf16.mxu0 %v2004_v2 }
  0x9a   :  { %1784 = vmatmul.mubr.msk.bf16.gmra.mxu0 %vm160_vm0, %v110_v38 }
  0x9b   :  { %479 = vmatprep.mubr.bf16.mxu0 %v2004_v2 }
  0xa2   :  { %1785 = vmatmul.mubr.msk.bf16.gmra.mxu0 %vm160_vm0, %v111_v41 }
  0xa3   :  { %489 = vmatprep.mubr.bf16.mxu0 %v2004_v2 }
  0xaa   :  { %1786 = vmatmul.mubr.msk.bf16.gmra.mxu0 %vm160_vm0, %v112_v44 }
  0xab   :  { %499 = vmatprep.mubr.bf16.mxu0 %v2004_v2 }
  0xb2   :  { %1787 = vmatmul.mubr.msk.bf16.gmra.mxu0 %vm160_vm0, %v113_v47 }
  0xb3   :  { %509 = vmatprep.mubr.bf16.mxu0 %v2004_v2 }
  0xba   :  { %1788 = vmatmul.mubr.msk.bf16.gmra.mxu0 %vm160_vm0, %v114_v50 }
  0xbb   :  { %519 = vmatprep.mubr.bf16.mxu0 %v2004_v2 }
  0xc2   :  { %1789 = vmatmul.mubr.msk.bf16.gmra.mxu0 %vm160_vm0, %v115_v53 }
  0xca   :  { %v291_v2 = vpop.f32.mrf.mxu0 }
  0xcb   :  { %v292_v1 = vadd.f32 %v291_v2, %v2385_v60 }
  0xcc   :  { %v293_v61 = vpop.f32.mrf.mxu0 }
  0xcd   :  { %v294_v63 = vadd.f32 %v293_v61, %v2383_v59  ;;  %v610_v9 = vmax.f32 %v292_v1, 0.0 }
  0xce   :  { %v295_v62 = vpop.f32.mrf.mxu0 }
  0xcf   :  { %v296_v0 = vadd.f32 %v295_v62, %v2385_v60  ;;  %v611_v7 = vmax.f32 %v294_v63, 0.0 }
  0xd0   :  { %v297_v3 = vpop.f32.mrf.mxu0 }
  0xd1   :  { %v298_v4 = vadd.f32 %v297_v3, %v2383_v59  ;;  %v612_v5 = vmax.f32 %v296_v0, 0.0 }
  0xd2   :  { %v301_v6 = vpop.f32.mrf.mxu0 }
  0xd3   :  { %v613_v8 = vmax.f32 %v298_v4, 0.0  ;;  %v738_v12 = vpack.c.bf16 %v612_v5, %v610_v9  ;;  %v302_v16 = vadd.f32 %v301_v6, %v2385_v60 }
  0xd4   :  { %v303_v10 = vpop.f32.mrf.mxu0 }
  0xd5   :  { %v739_v11 = vpack.c.bf16 %v613_v8, %v611_v7  ;;  %v304_v14 = vadd.f32 %v303_v10, %v2383_v59  ;;  %v614_v23 = vmax.f32 %v302_v16, 0.0 }
  0xd6   :  { %v305_v13 = vpop.f32.mrf.mxu0 }
  0xd7   :  { %v306_v15 = vadd.f32 %v305_v13, %v2385_v60  ;;  %969 = vmatprep.mubr.bf16.mxu1 %v739_v11  ;;  %v615_v21 = vmax.f32 %v304_v14, 0.0 }
  0xd8   :  { %v307_v17 = vpop.f32.mrf.mxu0  ;;  %970 = vmatmul.mubr.bf16.vlgmr.msra.gmra.mxu1 %v738_v12 }
  0xd9   :  { %v308_v18 = vadd.f32 %v307_v17, %v2383_v59  ;;  %v616_v19 = vmax.f32 %v306_v15, 0.0 }
  0xda   :  { %v311_v20 = vpop.f32.mrf.mxu0 }
  0xdb   :  { %v617_v22 = vmax.f32 %v308_v18, 0.0  ;;  %v740_v26 = vpack.c.bf16 %v616_v19, %v614_v23  ;;  %v312_v30 = vadd.f32 %v311_v20, %v2385_v60 }
  0xdc   :  { %v313_v24 = vpop.f32.mrf.mxu0 }
  0xdd   :  { %v741_v25 = vpack.c.bf16 %v617_v22, %v615_v21  ;;  %v314_v28 = vadd.f32 %v313_v24, %v2383_v59  ;;  %v618_v37 = vmax.f32 %v312_v30, 0.0  ;;  %v1975_v21 = vld [vmem:[%s2781_s5 + $0x30] sm:$0xff]  }
  0xde   :  { %v315_v27 = vpop.f32.mrf.mxu0  ;;  %1866 = vmatprep.subr.bf16.mxu0 %v1975_v21 }
  0xdf   :  { %v316_v29 = vadd.f32 %v315_v27, %v2385_v60  ;;  %977 = vmatprep.mubr.bf16.mxu1 %v741_v25  ;;  %v619_v35 = vmax.f32 %v314_v28, 0.0  ;;  %1867 = vmatpush3.bf16.msra.mxu0 %v1975_v21 }
  0xe0   :  { %v317_v31 = vpop.f32.mrf.mxu0  ;;  %978 = vmatmul.mubr.bf16.gmra.mxu1 %v740_v26 }
  0xe1   :  { %v318_v32 = vadd.f32 %v317_v31, %v2383_v59  ;;  %v620_v33 = vmax.f32 %v316_v29, 0.0 }
  0xe2   :  { %v321_v34 = vpop.f32.mrf.mxu0 }
  0xe3   :  { %v621_v36 = vmax.f32 %v318_v32, 0.0  ;;  %v742_v41 = vpack.c.bf16 %v620_v33, %v618_v37  ;;  %v322_v45 = vadd.f32 %v321_v34, %v2385_v60 }
  0xe4   :  { %v323_v38 = vpop.f32.mrf.mxu0 }
  0xe5   :  { %v743_v39 = vpack.c.bf16 %v621_v36, %v619_v35  ;;  %v324_v43 = vadd.f32 %v323_v38, %v2383_v59  ;;  %v622_v52 = vmax.f32 %v322_v45, 0.0 }
  0xe6   :  { %v325_v42 = vpop.f32.mrf.mxu0 }
  0xe7   :  { %v326_v44 = vadd.f32 %v325_v42, %v2385_v60  ;;  %985 = vmatprep.mubr.bf16.mxu1 %v743_v39  ;;  %v623_v50 = vmax.f32 %v324_v43, 0.0 }
  0xe8   :  { %v327_v46 = vpop.f32.mrf.mxu0  ;;  %986 = vmatmul.mubr.bf16.gmra.mxu1 %v742_v41 }
  0xe9   :  { %v328_v47 = vadd.f32 %v327_v46, %v2383_v59  ;;  %v624_v48 = vmax.f32 %v326_v44, 0.0 }
  0xea   :  { %v331_v49 = vpop.f32.mrf.mxu0 }
  0xeb   :  { %v625_v51 = vmax.f32 %v328_v47, 0.0  ;;  %v744_v55 = vpack.c.bf16 %v624_v48, %v622_v52  ;;  %v332_v2 = vadd.f32 %v331_v49, %v2385_v60 }
  0xec   :  { %v333_v53 = vpop.f32.mrf.mxu0 }
  0xed   :  { %v745_v54 = vpack.c.bf16 %v625_v51, %v623_v50  ;;  %v334_v57 = vadd.f32 %v333_v53, %v2383_v59  ;;  %v626_v4 = vmax.f32 %v332_v2, 0.0 }
  0xee   :  { %v335_v56 = vpop.f32.mrf.mxu0 }
  0xef   :  { %v336_v58 = vadd.f32 %v335_v56, %v2385_v60  ;;  %993 = vmatprep.mubr.bf16.mxu1 %v745_v54  ;;  %v627_v1 = vmax.f32 %v334_v57, 0.0  ;;  %v1976_v57 = vld [vmem:[%s2781_s5 + $0x28] sm:$0xff]  }
  0xf0   :  { %v337_v61 = vpop.f32.mrf.mxu0  ;;  %994 = vmatmul.mubr.bf16.gmra.mxu1 %v744_v55  ;;  %1868 = vmatprep.subr.bf16.mxu0 %v1976_v57 }
  0xf1   :  { %v338_v62 = vadd.f32 %v337_v61, %v2383_v59  ;;  %v628_v63 = vmax.f32 %v336_v58, 0.0  ;;  %v1977_v58 = vld [vmem:[%s2781_s5 + $0x20] sm:$0xff]   ;;  %1869 = vmatpush3.bf16.msra.mxu0 %v1976_v57 }
  0xf2   :  { %v341_v0 = vpop.f32.mrf.mxu0  ;;  %1870 = vmatprep.subr.bf16.mxu0 %v1977_v58 }
  0xf3   :  { %v629_v3 = vmax.f32 %v338_v62, 0.0  ;;  %v746_v7 = vpack.c.bf16 %v628_v63, %v626_v4  ;;  %v342_v11 = vadd.f32 %v341_v0, %v2385_v60 }
  0xf4   :  { %v343_v5 = vpop.f32.mrf.mxu0 }
  0xf5   :  { %v747_v6 = vpack.c.bf16 %v629_v3, %v627_v1  ;;  %v344_v9 = vadd.f32 %v343_v5, %v2383_v59  ;;  %v630_v18 = vmax.f32 %v342_v11, 0.0  ;;  %1871 = vmatpush3.bf16.msra.mxu0 %v1977_v58  ;;  %v1978_v11 = vld [vmem:[%s2781_s5 + $0x18] sm:$0xff]  }
  0xf6   :  { %v345_v8 = vpop.f32.mrf.mxu0  ;;  %1872 = vmatprep.subr.bf16.mxu0 %v1978_v11 }
  0xf7   :  { %v346_v10 = vadd.f32 %v345_v8, %v2385_v60  ;;  %1001 = vmatprep.mubr.bf16.mxu1 %v747_v6  ;;  %v631_v16 = vmax.f32 %v344_v9, 0.0 }
  0xf8   :  { %v347_v12 = vpop.f32.mrf.mxu0  ;;  %1002 = vmatmul.mubr.bf16.gmra.mxu1 %v746_v7 }
  0xf9   :  { %v348_v13 = vadd.f32 %v347_v12, %v2383_v59  ;;  %v632_v14 = vmax.f32 %v346_v10, 0.0  ;;  %1873 = vmatpush3.bf16.msra.mxu0 %v1978_v11 }
  0xfa   :  { %v351_v15 = vpop.f32.mrf.mxu0 }
  0xfb   :  { %v633_v17 = vmax.f32 %v348_v13, 0.0  ;;  %v748_v22 = vpack.c.bf16 %v632_v14, %v630_v18  ;;  %v352_v26 = vadd.f32 %v351_v15, %v2385_v60  ;;  %v2442_v14 = vpop.f32.mrf.mxu1 }
  0xfc   :  { %v353_v19 = vpop.f32.mrf.mxu0 }
  0xfd   :  { %v749_v20 = vpack.c.bf16 %v633_v17, %v631_v16  ;;  %v354_v24 = vadd.f32 %v353_v19, %v2383_v59  ;;  %v634_v33 = vmax.f32 %v352_v26, 0.0 }
  0xfe   :  { %v355_v23 = vpop.f32.mrf.mxu0 }
  0xff   :  { %v356_v25 = vadd.f32 %v355_v23, %v2385_v60  ;;  %1009 = vmatprep.mubr.bf16.mxu1 %v749_v20  ;;  %v635_v31 = vmax.f32 %v354_v24, 0.0  ;;  %v1979_v20 = vld [vmem:[%s2781_s5 + $0x10] sm:$0xff]   ;;  %v2447_v23 = vpop.f32.mrf.mxu1 }
 0x100   :  { %v357_v27 = vpop.f32.mrf.mxu0  ;;  %1010 = vmatmul.mubr.bf16.gmra.mxu1 %v748_v22  ;;  %1874 = vmatprep.subr.bf16.mxu0 %v1979_v20 }
 0x101   :  { %v358_v28 = vadd.f32 %v357_v27, %v2383_v59  ;;  %v636_v29 = vmax.f32 %v356_v25, 0.0  ;;  %1875 = vmatpush3.bf16.msra.mxu0 %v1979_v20 }
 0x102   :  { %v361_v30 = vpop.f32.mrf.mxu0 }
 0x103   :  { %v637_v32 = vmax.f32 %v358_v28, 0.0  ;;  %v750_v36 = vpack.c.bf16 %v636_v29, %v634_v33  ;;  %v362_v40 = vadd.f32 %v361_v30, %v2385_v60  ;;  %v1980_v29 = vld [vmem:[%s2781_s5 + $0x8] sm:$0xff]  }
 0x104   :  { %v363_v34 = vpop.f32.mrf.mxu0  ;;  %1876 = vmatprep.subr.bf16.mxu0 %v1980_v29 }
 0x105   :  { %v751_v35 = vpack.c.bf16 %v637_v32, %v635_v31  ;;  %v364_v38 = vadd.f32 %v363_v34, %v2383_v59  ;;  %v638_v47 = vmax.f32 %v362_v40, 0.0  ;;  %v2456_v32 = vpop.f32.mrf.mxu1  ;;  %1877 = vmatpush3.bf16.msra.mxu0 %v1980_v29 }
 0x106   :  { %v365_v37 = vpop.f32.mrf.mxu0 }
 0x107   :  { %v366_v39 = vadd.f32 %v365_v37, %v2385_v60  ;;  %1017 = vmatprep.mubr.bf16.mxu1 %v751_v35  ;;  %v639_v45 = vmax.f32 %v364_v38, 0.0  ;;  %v1981_v38 = vld [vmem:[%s2781_s5] sm:$0xff]  }
 0x108   :  { %v367_v41 = vpop.f32.mrf.mxu0  ;;  %1018 = vmatmul.mubr.bf16.gmra.mxu1 %v750_v36  ;;  %1878 = vmatprep.subr.bf16.mxu0 %v1981_v38 }
 0x109   :  { %v368_v42 = vadd.f32 %v367_v41, %v2383_v59  ;;  %v640_v43 = vmax.f32 %v366_v39, 0.0  ;;  %v2461_v41 = vpop.f32.mrf.mxu1  ;;  %1879 = vmatpush3.bf16.msra.mxu0 %v1981_v38 }
 0x10a   :  { %v371_v44 = vpop.f32.mrf.mxu0 }
 0x10b   :  { %v641_v46 = vmax.f32 %v368_v42, 0.0  ;;  %v752_v50 = vpack.c.bf16 %v640_v43, %v638_v47  ;;  %v372_v54 = vadd.f32 %v371_v44, %v2385_v60 }
 0x10c   :  { %v373_v48 = vpop.f32.mrf.mxu0 }
 0x10d   :  { %v753_v49 = vpack.c.bf16 %v641_v46, %v639_v45  ;;  %v374_v52 = vadd.f32 %v373_v48, %v2383_v59  ;;  %v642_v0 = vmax.f32 %v372_v54, 0.0 }
 0x10e   :  { %v375_v51 = vpop.f32.mrf.mxu0 }
 0x10f   :  { %v376_v53 = vadd.f32 %v375_v51, %v2385_v60  ;;  %1025 = vmatprep.mubr.bf16.mxu1 %v753_v49  ;;  %v643_v62 = vmax.f32 %v374_v52, 0.0  ;;  %v2467_v49 = vpop.f32.mrf.mxu1 }
 0x110   :  { %v377_v55 = vpop.f32.mrf.mxu0  ;;  %1026 = vmatmul.mubr.bf16.gmra.mxu1 %v752_v50 }
 0x111   :  { %v378_v56 = vadd.f32 %v377_v55, %v2383_v59  ;;  %v644_v2 = vmax.f32 %v376_v53, 0.0  ;;  %v2469_v57 = vpop.f32.mrf.mxu1 }
 0x112   :  { %v381_v61 = vpop.f32.mrf.mxu0 }
 0x113   :  { %v645_v63 = vmax.f32 %v378_v56, 0.0  ;;  %v754_v4 = vpack.c.bf16 %v644_v2, %v642_v0  ;;  %v382_v8 = vadd.f32 %v381_v61, %v2385_v60 }
 0x114   :  { %v383_v1 = vpop.f32.mrf.mxu0 }
 0x115   :  { %v755_v3 = vpack.c.bf16 %v645_v63, %v643_v62  ;;  %v384_v6 = vadd.f32 %v383_v1, %v2383_v59  ;;  %v646_v17 = vmax.f32 %v382_v8, 0.0 }
 0x116   :  { %v385_v5 = vpop.f32.mrf.mxu0 }
 0x117   :  { %v386_v7 = vadd.f32 %v385_v5, %v2385_v60  ;;  %1033 = vmatprep.mubr.bf16.mxu1 %v755_v3  ;;  %v647_v15 = vmax.f32 %v384_v6, 0.0  ;;  %v2475_v3 = vpop.f32.mrf.mxu1 }
 0x118   :  { %v387_v9 = vpop.f32.mrf.mxu0  ;;  %1034 = vmatmul.mubr.bf16.gmra.mxu1 %v754_v4 }
 0x119   :  { %v388_v10 = vadd.f32 %v387_v9, %v2383_v59  ;;  %v648_v12 = vmax.f32 %v386_v7, 0.0  ;;  %v2477_v11 = vpop.f32.mrf.mxu1 }
 0x11a   :  { %v391_v13 = vpop.f32.mrf.mxu0 }
 0x11b   :  { %v649_v16 = vmax.f32 %v388_v10, 0.0  ;;  %v756_v21 = vpack.c.bf16 %v648_v12, %v646_v17  ;;  %v392_v26 = vadd.f32 %v391_v13, %v2385_v60  ;;  %v2483_v20 = vpop.f32.mrf.mxu1 }
 0x11c   :  { %v393_v18 = vpop.f32.mrf.mxu0 }
 0x11d   :  { %v757_v19 = vpack.c.bf16 %v649_v16, %v647_v15  ;;  %v394_v24 = vadd.f32 %v393_v18, %v2383_v59  ;;  %v650_v35 = vmax.f32 %v392_v26, 0.0  ;;  %v2485_v29 = vpop.f32.mrf.mxu1 }
 0x11e   :  { %v395_v22 = vpop.f32.mrf.mxu0 }
 0x11f   :  { %v396_v25 = vadd.f32 %v395_v22, %v2385_v60  ;;  %1041 = vmatprep.mubr.bf16.mxu1 %v757_v19  ;;  %v651_v33 = vmax.f32 %v394_v24, 0.0  ;;  %v2491_v38 = vpop.f32.mrf.mxu1 }
 0x120   :  { %v397_v27 = vpop.f32.mrf.mxu0  ;;  %1042 = vmatmul.mubr.bf16.gmra.mxu1 %v756_v21 }
 0x121   :  { %v398_v28 = vadd.f32 %v397_v27, %v2383_v59  ;;  %v652_v30 = vmax.f32 %v396_v25, 0.0 }
 0x122   :  { %v401_v31 = vpop.f32.mrf.mxu0 }
 0x123   :  { %v653_v34 = vmax.f32 %v398_v28, 0.0  ;;  %v758_v39 = vpack.c.bf16 %v652_v30, %v650_v35  ;;  %v402_v44 = vadd.f32 %v401_v31, %v2385_v60 }
 0x124   :  { %v403_v36 = vpop.f32.mrf.mxu0 }
 0x125   :  { %v759_v37 = vpack.c.bf16 %v653_v34, %v651_v33  ;;  %v404_v42 = vadd.f32 %v403_v36, %v2383_v59  ;;  %v654_v52 = vmax.f32 %v402_v44, 0.0 }
 0x126   :  { %v405_v40 = vpop.f32.mrf.mxu0 }
 0x127   :  { %v406_v43 = vadd.f32 %v405_v40, %v2385_v60  ;;  %1049 = vmatprep.mubr.bf16.mxu1 %v759_v37  ;;  %v655_v50 = vmax.f32 %v404_v42, 0.0 }
 0x128   :  { %v407_v45 = vpop.f32.mrf.mxu0  ;;  %1050 = vmatmul.mubr.bf16.gmra.mxu1 %v758_v39 }
 0x129   :  { %v408_v46 = vadd.f32 %v407_v45, %v2383_v59  ;;  %v656_v47 = vmax.f32 %v406_v43, 0.0 }
 0x12a   :  { %v411_v48 = vpop.f32.mrf.mxu0 }
 0x12b   :  { %v657_v51 = vmax.f32 %v408_v46, 0.0  ;;  %v760_v55 = vpack.c.bf16 %v656_v47, %v654_v52  ;;  %v412_v61 = vadd.f32 %v411_v48, %v2385_v60  ;;  %v2493_v47 = vpop.f32.mrf.mxu1 }
 0x12c   :  { %v413_v53 = vpop.f32.mrf.mxu0 }
 0x12d   :  { %v761_v54 = vpack.c.bf16 %v657_v51, %v655_v50  ;;  %v414_v58 = vadd.f32 %v413_v53, %v2383_v59  ;;  %v658_v6 = vmax.f32 %v412_v61, 0.0 }
 0x12e   :  { %v415_v56 = vpop.f32.mrf.mxu0 }
 0x12f   :  { %v416_v2 = vadd.f32 %v415_v56, %v2385_v60  ;;  %1057 = vmatprep.mubr.bf16.mxu1 %v761_v54  ;;  %v659_v4 = vmax.f32 %v414_v58, 0.0  ;;  %v2499_v56 = vpop.f32.mrf.mxu1 }
 0x130   :  { %v417_v62 = vpop.f32.mrf.mxu0  ;;  %1058 = vmatmul.mubr.bf16.gmra.mxu1 %v760_v55 }
 0x131   :  { %v418_v63 = vadd.f32 %v417_v62, %v2383_v59  ;;  %v660_v0 = vmax.f32 %v416_v2, 0.0 }
 0x132   :  { %v421_v1 = vpop.f32.mrf.mxu0 }
 0x133   :  { %v661_v5 = vmax.f32 %v418_v63, 0.0  ;;  %v762_v9 = vpack.c.bf16 %v660_v0, %v658_v6  ;;  %v422_v15 = vadd.f32 %v421_v1, %v2385_v60 }
 0x134   :  { %v423_v7 = vpop.f32.mrf.mxu0 }
 0x135   :  { %v763_v8 = vpack.c.bf16 %v661_v5, %v659_v4  ;;  %v424_v12 = vadd.f32 %v423_v7, %v2383_v59  ;;  %v662_v24 = vmax.f32 %v422_v15, 0.0  ;;  %v2501_v4 = vpop.f32.mrf.mxu1 }
 0x136   :  { %v425_v10 = vpop.f32.mrf.mxu0 }
 0x137   :  { %v426_v13 = vadd.f32 %v425_v10, %v2385_v60  ;;  %1065 = vmatprep.mubr.bf16.mxu1 %v763_v8  ;;  %v663_v21 = vmax.f32 %v424_v12, 0.0 }
 0x138   :  { %v427_v16 = vpop.f32.mrf.mxu0  ;;  %1066 = vmatmul.mubr.bf16.gmra.mxu1 %v762_v9 }
 0x139   :  { %v428_v17 = vadd.f32 %v427_v16, %v2383_v59  ;;  %v664_v18 = vmax.f32 %v426_v13, 0.0  ;;  %v2507_v13 = vpop.f32.mrf.mxu1 }
 0x13a   :  { %v431_v19 = vpop.f32.mrf.mxu0 }
 0x13b   :  { %v665_v22 = vmax.f32 %v428_v17, 0.0  ;;  %v764_v27 = vpack.c.bf16 %v664_v18, %v662_v24  ;;  %v432_v33 = vadd.f32 %v431_v19, %v2385_v60  ;;  %v2509_v24 = vpop.f32.mrf.mxu1 }
 0x13c   :  { %v433_v25 = vpop.f32.mrf.mxu0 }
 0x13d   :  { %v765_v26 = vpack.c.bf16 %v665_v22, %v663_v21  ;;  %v434_v30 = vadd.f32 %v433_v25, %v2383_v59  ;;  %v666_v42 = vmax.f32 %v432_v33, 0.0 }
 0x13e   :  { %v435_v28 = vpop.f32.mrf.mxu0 }
 0x13f   :  { %v436_v31 = vadd.f32 %v435_v28, %v2385_v60  ;;  %1073 = vmatprep.mubr.bf16.mxu1 %v765_v26  ;;  %v667_v39 = vmax.f32 %v434_v30, 0.0 }
 0x140   :  { %v437_v34 = vpop.f32.mrf.mxu0  ;;  %1074 = vmatmul.mubr.bf16.gmra.mxu1 %v764_v27 }
 0x141   :  { %v438_v35 = vadd.f32 %v437_v34, %v2383_v59  ;;  %v668_v36 = vmax.f32 %v436_v31, 0.0  ;;  %v2515_v34 = vpop.f32.mrf.mxu1 }
 0x142   :  { %v441_v37 = vpop.f32.mrf.mxu0 }
 0x143   :  { %v669_v40 = vmax.f32 %v438_v35, 0.0  ;;  %v766_v45 = vpack.c.bf16 %v668_v36, %v666_v42  ;;  %v442_v51 = vadd.f32 %v441_v37, %v2385_v60 }
 0x144   :  { %v443_v43 = vpop.f32.mrf.mxu0 }
 0x145   :  { %v767_v44 = vpack.c.bf16 %v669_v40, %v667_v39  ;;  %v444_v48 = vadd.f32 %v443_v43, %v2383_v59  ;;  %v670_v61 = vmax.f32 %v442_v51, 0.0 }
 0x146   :  { %v445_v46 = vpop.f32.mrf.mxu0 }
 0x147   :  { %v446_v50 = vadd.f32 %v445_v46, %v2385_v60  ;;  %1081 = vmatprep.mubr.bf16.mxu1 %v767_v44  ;;  %v671_v58 = vmax.f32 %v444_v48, 0.0  ;;  %v2517_v44 = vpop.f32.mrf.mxu1 }
 0x148   :  { %v447_v52 = vpop.f32.mrf.mxu0  ;;  %1082 = vmatmul.mubr.bf16.gmra.mxu1 %v766_v45 }
 0x149   :  { %v448_v53 = vadd.f32 %v447_v52, %v2383_v59  ;;  %v672_v54 = vmax.f32 %v446_v50, 0.0 }
 0x14a   :  { %v451_v55 = vpop.f32.mrf.mxu0 }
 0x14b   :  { %v673_v2 = vmax.f32 %v448_v53, 0.0  ;;  %v768_v0 = vpack.c.bf16 %v672_v54, %v670_v61  ;;  %v452_v7 = vadd.f32 %v451_v55, %v2385_v60  ;;  %v2523_v54 = vpop.f32.mrf.mxu1 }
 0x14c   :  { %v453_v62 = vpop.f32.mrf.mxu0 }
 0x14d   :  { %v769_v63 = vpack.c.bf16 %v673_v2, %v671_v58  ;;  %v454_v5 = vadd.f32 %v453_v62, %v2383_v59  ;;  %v674_v17 = vmax.f32 %v452_v7, 0.0 }
 0x14e   :  { %v455_v1 = vpop.f32.mrf.mxu0 }
 0x14f   :  { %v456_v6 = vadd.f32 %v455_v1, %v2385_v60  ;;  %1089 = vmatprep.mubr.bf16.mxu1 %v769_v63  ;;  %v675_v15 = vmax.f32 %v454_v5, 0.0  ;;  %v2525_v1 = vpop.f32.mrf.mxu1 }
 0x150   :  { %v457_v8 = vpop.f32.mrf.mxu0  ;;  %1090 = vmatmul.mubr.bf16.gmra.mxu1 %v768_v0 }
 0x151   :  { %v458_v9 = vadd.f32 %v457_v8, %v2383_v59  ;;  %v676_v10 = vmax.f32 %v456_v6, 0.0 }
 0x152   :  { %v461_v12 = vpop.f32.mrf.mxu0 }
 0x153   :  { %v677_v16 = vmax.f32 %v458_v9, 0.0  ;;  %v770_v21 = vpack.c.bf16 %v676_v10, %v674_v17  ;;  %v462_v27 = vadd.f32 %v461_v12, %v2385_v60 }
 0x154   :  { %v463_v18 = vpop.f32.mrf.mxu0 }
 0x155   :  { %v771_v19 = vpack.c.bf16 %v677_v16, %v675_v15  ;;  %v464_v25 = vadd.f32 %v463_v18, %v2383_v59  ;;  %v678_v37 = vmax.f32 %v462_v27, 0.0  ;;  %v2531_v15 = vpop.f32.mrf.mxu1 }
 0x156   :  { %v465_v22 = vpop.f32.mrf.mxu0 }
 0x157   :  { %v466_v26 = vadd.f32 %v465_v22, %v2385_v60  ;;  %1097 = vmatprep.mubr.bf16.mxu1 %v771_v19  ;;  %v679_v35 = vmax.f32 %v464_v25, 0.0 }
 0x158   :  { %v467_v28 = vpop.f32.mrf.mxu0  ;;  %1098 = vmatmul.mubr.bf16.gmra.mxu1 %v770_v21 }
 0x159   :  { %v468_v30 = vadd.f32 %v467_v28, %v2383_v59  ;;  %v680_v31 = vmax.f32 %v466_v26, 0.0  ;;  %v2533_v26 = vpop.f32.mrf.mxu1 }
 0x15a   :  { %v471_v33 = vpop.f32.mrf.mxu0 }
 0x15b   :  { %v681_v36 = vmax.f32 %v468_v30, 0.0  ;;  %v772_v42 = vpack.c.bf16 %v680_v31, %v678_v37  ;;  %v472_v48 = vadd.f32 %v471_v33, %v2385_v60  ;;  %v2539_v37 = vpop.f32.mrf.mxu1 }
 0x15c   :  { %v473_v39 = vpop.f32.mrf.mxu0 }
 0x15d   :  { %v773_v40 = vpack.c.bf16 %v681_v36, %v679_v35  ;;  %v474_v45 = vadd.f32 %v473_v39, %v2383_v59  ;;  %v682_v2 = vmax.f32 %v472_v48, 0.0 }
 0x15e   :  { %v475_v43 = vpop.f32.mrf.mxu0 }
 0x15f   :  { %v476_v46 = vadd.f32 %v475_v43, %v2385_v60  ;;  %1105 = vmatprep.mubr.bf16.mxu1 %v773_v40  ;;  %v683_v55 = vmax.f32 %v474_v45, 0.0 }
 0x160   :  { %v477_v50 = vpop.f32.mrf.mxu0  ;;  %1106 = vmatmul.mubr.bf16.gmra.mxu1 %v772_v42 }
 0x161   :  { %v478_v51 = vadd.f32 %v477_v50, %v2383_v59  ;;  %v684_v52 = vmax.f32 %v476_v46, 0.0  ;;  %v2541_v50 = vpop.f32.mrf.mxu1 }
 0x162   :  { %v481_v53 = vpop.f32.mrf.mxu0 }
 0x163   :  { %v685_v58 = vmax.f32 %v478_v51, 0.0  ;;  %v774_v63 = vpack.c.bf16 %v684_v52, %v682_v2  ;;  %v482_v7 = vadd.f32 %v481_v53, %v2385_v60 }
 0x164   :  { %v483_v61 = vpop.f32.mrf.mxu0 }
 0x165   :  { %v775_v62 = vpack.c.bf16 %v685_v58, %v683_v55  ;;  %v484_v5 = vadd.f32 %v483_v61, %v2383_v59  ;;  %v686_v18 = vmax.f32 %v482_v7, 0.0 }
 0x166   :  { %v485_v0 = vpop.f32.mrf.mxu0 }
 0x167   :  { %v486_v6 = vadd.f32 %v485_v0, %v2385_v60  ;;  %1113 = vmatprep.mubr.bf16.mxu1 %v775_v62  ;;  %v687_v16 = vmax.f32 %v484_v5, 0.0  ;;  %v2547_v62 = vpop.f32.mrf.mxu1 }
 0x168   :  { %v487_v8 = vpop.f32.mrf.mxu0  ;;  %1114 = vmatmul.mubr.bf16.gmra.mxu1 %v774_v63 }
 0x169   :  { %v488_v9 = vadd.f32 %v487_v8, %v2383_v59  ;;  %v688_v10 = vmax.f32 %v486_v6, 0.0 }
 0x16a   :  { %v491_v12 = vpop.f32.mrf.mxu0 }
 0x16b   :  { %v689_v17 = vmax.f32 %v488_v9, 0.0  ;;  %v776_v22 = vpack.c.bf16 %v688_v10, %v686_v18  ;;  %v492_v30 = vadd.f32 %v491_v12, %v2385_v60  ;;  %v2549_v10 = vpop.f32.mrf.mxu1 }
 0x16c   :  { %v493_v19 = vpop.f32.mrf.mxu0 }
 0x16d   :  { %v777_v21 = vpack.c.bf16 %v689_v17, %v687_v16  ;;  %v494_v27 = vadd.f32 %v493_v19, %v2383_v59  ;;  %v690_v42 = vmax.f32 %v492_v30, 0.0 }
 0x16e   :  { %v495_v25 = vpop.f32.mrf.mxu0 }
 0x16f   :  { %v496_v28 = vadd.f32 %v495_v25, %v2385_v60  ;;  %1121 = vmatprep.mubr.bf16.mxu1 %v777_v21  ;;  %v691_v39 = vmax.f32 %v494_v27, 0.0  ;;  %v2555_v25 = vpop.f32.mrf.mxu1 }
 0x170   :  { %v497_v31 = vpop.f32.mrf.mxu0  ;;  %1122 = vmatmul.mubr.bf16.gmra.mxu1 %v776_v22 }
 0x171   :  { %v498_v33 = vadd.f32 %v497_v31, %v2383_v59  ;;  %v692_v35 = vmax.f32 %v496_v28, 0.0 }
 0x172   :  { %v501_v36 = vpop.f32.mrf.mxu0 }
 0x173   :  { %v693_v40 = vmax.f32 %v498_v33, 0.0  ;;  %v778_v46 = vpack.c.bf16 %v692_v35, %v690_v42  ;;  %v502_v53 = vadd.f32 %v501_v36, %v2385_v60  ;;  %v538_v42 = vadd.f32 %v2461_v41, %v2383_v59 }
 0x174   :  { %v503_v43 = vpop.f32.mrf.mxu0 }
 0x175   :  { %v779_v45 = vpack.c.bf16 %v693_v40, %v691_v39  ;;  %v504_v51 = vadd.f32 %v503_v43, %v2383_v59  ;;  %v694_v5 = vmax.f32 %v502_v53, 0.0  ;;  %v2557_v39 = vpop.f32.mrf.mxu1  ;;  %v534_v40 = vadd.f32 %v2447_v23, %v2383_v59 }
 0x176   :  { %v505_v48 = vpop.f32.mrf.mxu0 }
 0x177   :  { %v506_v52 = vadd.f32 %v505_v48, %v2385_v60  ;;  %1129 = vmatprep.mubr.bf16.mxu1 %v779_v45  ;;  %v695_v63 = vmax.f32 %v504_v51, 0.0  ;;  %v2567_v53 = vpop.f32.mrf.mxu1 }
 0x178   :  { %v507_v55 = vpop.f32.mrf.mxu0  ;;  %1130 = vmatmul.mubr.bf16.gmra.mxu1 %v778_v46 }
 0x179   :  { %v508_v58 = vadd.f32 %v507_v55, %v2383_v59  ;;  %v696_v2 = vmax.f32 %v506_v52, 0.0  ;;  %v707_v55 = vmax.f32 %v534_v40, 0.0 }
 0x17a   :  { %v511_v61 = vpop.f32.mrf.mxu0 }
 0x17b   :  { %v697_v0 = vmax.f32 %v508_v58, 0.0  ;;  %v780_v8 = vpack.c.bf16 %v696_v2, %v694_v5  ;;  %v512_v17 = vadd.f32 %v511_v61, %v2385_v60  ;;  %v709_v58 = vmax.f32 %v538_v42, 0.0 }
 0x17c   :  { %v513_v6 = vpop.f32.mrf.mxu0  ;;  %v552_v42 = vadd.f32 %v2483_v20, %v2385_v60 }
 0x17d   :  { %v781_v7 = vpack.c.bf16 %v697_v0, %v695_v63  ;;  %v514_v12 = vadd.f32 %v513_v6, %v2383_v59  ;;  %v698_v30 = vmax.f32 %v512_v17, 0.0  ;;  %v532_v63 = vadd.f32 %v2442_v14, %v2385_v60  ;;  %v2573_v6 = vpop.f32.mrf.mxu1 }
 0x17e   :  { %v515_v9 = vpop.f32.mrf.mxu0  ;;  %v536_v0 = vadd.f32 %v2456_v32, %v2385_v60  ;;  %v542_v32 = vadd.f32 %v2467_v49, %v2385_v60 }
 0x17f   :  { %v516_v16 = vadd.f32 %v515_v9, %v2385_v60  ;;  %1137 = vmatprep.mubr.bf16.mxu1 %v781_v7  ;;  %v699_v27 = vmax.f32 %v514_v12, 0.0  ;;  %v544_v7 = vadd.f32 %v2469_v57, %v2383_v59  ;;  %v787_v9 = vpack.c.bf16 %v709_v58, %v707_v55  ;;  %v2579_v17 = vpop.f32.mrf.mxu1 }
 0x180   :  { %v517_v18 = vpop.f32.mrf.mxu0  ;;  %1138 = vmatmul.mubr.bf16.gmra.mxu1 %v780_v8  ;;  %v548_v8 = vadd.f32 %v2477_v11, %v2383_v59  ;;  %v706_v12 = vmax.f32 %v532_v63, 0.0  ;;  %v554_v11 = vadd.f32 %v2485_v29, %v2383_v59  ;;  %v710_v49 = vmax.f32 %v542_v32, 0.0 }
 0x181   :  { %v518_v19 = vadd.f32 %v517_v18, %v2383_v59  ;;  %v700_v21 = vmax.f32 %v516_v16, 0.0  ;;  %v708_v16 = vmax.f32 %v536_v0, 0.0  ;;  %v711_v14 = vmax.f32 %v544_v7, 0.0 }
 0x182   :  { %v521_v22 = vpop.f32.mrf.mxu0  ;;  %v713_v18 = vmax.f32 %v548_v8, 0.0  ;;  %v566_v0 = vadd.f32 %v2507_v13, %v2385_v60 }
 0x183   :  { %v701_v28 = vmax.f32 %v518_v19, 0.0  ;;  %v782_v35 = vpack.c.bf16 %v700_v21, %v698_v30  ;;  %v522_v46 = vadd.f32 %v521_v22, %v2385_v60  ;;  %v546_v19 = vadd.f32 %v2475_v3, %v2385_v60  ;;  %v2585_v21 = vpop.f32.mrf.mxu1 }
 0x184   :  { %v523_v31 = vpop.f32.mrf.mxu0  ;;  %v786_v57 = vpack.c.bf16 %v708_v16, %v706_v12  ;;  %v558_v22 = vadd.f32 %v2493_v47, %v2383_v59  ;;  %v574_v12 = vadd.f32 %v2517_v44, %v2383_v59  ;;  %v578_v16 = vadd.f32 %v2525_v1, %v2383_v59 }
 0x185   :  { %v783_v33 = vpack.c.bf16 %v701_v28, %v699_v27  ;;  %v524_v43 = vadd.f32 %v523_v31, %v2383_v59  ;;  %v702_v61 = vmax.f32 %v522_v46, 0.0  ;;  %v789_v27 = vpack.c.bf16 %v713_v18, %v711_v14  ;;  %v2594_v28 = vld [vmem:[%s2780_s4] ss:$0 sm:$0xff] }
 0x186   :  { %v525_v36 = vpop.f32.mrf.mxu0  ;;  %v712_v31 = vmax.f32 %v546_v19, 0.0  ;;  %v568_v46 = vadd.f32 %v2509_v24, %v2383_v59  ;;  %v562_v24 = vadd.f32 %v2499_v56, %v2385_v60  ;;  %v720_v56 = vmax.f32 %v566_v0, 0.0 }
 0x187   :  { %v526_v45 = vadd.f32 %v525_v36, %v2385_v60  ;;  %1145 = vmatprep.mubr.bf16.mxu1 %v783_v33  ;;  %v703_v23 = vmax.f32 %v524_v43, 0.0  ;;  %v715_v33 = vmax.f32 %v554_v11, 0.0  ;;  %v556_v43 = vadd.f32 %v2491_v38, %v2385_v60 }
 0x188   :  { %v527_v48 = vpop.f32.mrf.mxu0  ;;  %1146 = vmatmul.mubr.bf16.gmra.mxu1 %v782_v35  ;;  %v717_v35 = vmax.f32 %v558_v22, 0.0  ;;  %v788_v40 = vpack.c.bf16 %v712_v31, %v710_v49  ;;  %v718_v19 = vmax.f32 %v562_v24, 0.0  ;;  %v723_v11 = vmax.f32 %v574_v12, 0.0 }
 0x189   :  { %v528_v51 = vadd.f32 %v527_v48, %v2383_v59  ;;  %v704_v52 = vmax.f32 %v526_v45, 0.0  ;;  %v564_v45 = vadd.f32 %v2501_v4, %v2383_v59  ;;  %v725_v22 = vmax.f32 %v578_v16, 0.0 }
 0x18a   :  { %v791_v55 = vpack.c.bf16 %v717_v35, %v715_v33  ;;  %v792_v49 = vpack.c.bf16 %v720_v56, %v718_v19  ;;  %v572_v1 = vadd.f32 %v2515_v34, %v2385_v60  ;;  %v576_v31 = vadd.f32 %v2523_v54, %v2385_v60 }
 0x18b   :  { %v705_v2 = vmax.f32 %v528_v51, 0.0  ;;  %v784_v5 = vpack.c.bf16 %v704_v52, %v702_v61  ;;  %v716_v61 = vmax.f32 %v556_v43, 0.0  ;;  %v719_v20 = vmax.f32 %v564_v45, 0.0 }
 0x18c   :  { %v588_v33 = vadd.f32 %v2541_v50, %v2383_v59  ;;  %v722_v43 = vmax.f32 %v572_v1, 0.0  ;;  %v724_v45 = vmax.f32 %v576_v31, 0.0  ;;  %v604_v12 = vadd.f32 %v2573_v6, %v2383_v59 }
 0x18d   :  { %v785_v41 = vpack.c.bf16 %v705_v2, %v703_v23  ;;  %v714_v2 = vmax.f32 %v552_v42, 0.0 }
 0x18e   :  { %v794_v50 = vpack.c.bf16 %v724_v45, %v722_v43 }
 0x18f   :  { %1153 = vmatprep.mubr.bf16.mxu1 %v785_v41  ;;  %v721_v41 = vmax.f32 %v568_v46, 0.0  ;;  %v790_v7 = vpack.c.bf16 %v716_v61, %v714_v2  ;;  %v729_v46 = vmax.f32 %v588_v33, 0.0  ;;  %v594_v2 = vadd.f32 %v2549_v10, %v2383_v59 }
 0x190   :  { %1154 = vmatmul.mubr.bf16.gmra.mxu1 %v784_v5  ;;  %v598_v61 = vadd.f32 %v2557_v39, %v2383_v59  ;;  %v592_v39 = vadd.f32 %v2547_v62, %v2385_v60 }
 0x191   :  { %1161 = vmatprep.mubr.bf16.mxu1 %v787_v9  ;;  %v793_v9 = vpack.c.bf16 %v721_v41, %v719_v20  ;;  %v731_v0 = vmax.f32 %v594_v2, 0.0 }
 0x198   :  { %v971_v30 = vpop.f32.mrf.mxu1  ;;  %1162 = vmatmul.mubr.bf16.gmra.mxu1 %v786_v57 }
 0x199   :  { %1169 = vmatprep.mubr.bf16.mxu1 %v789_v27  ;;  %v972_v36 = vadd.f32 %v2594_v28, %v971_v30 }
 0x19a   :  { %v973_v3 = vpop.f32.mrf.mxu1 }
 0x19b   :  { %v1226_v51 = vmax.f32 %v972_v36, 0.0  ;;  %v584_v3 = vadd.f32 %v2533_v26, %v2383_v59 }
 0x19c   :  { %v974_v29 = vpop.f32.mrf.mxu1 }
 0x19d   :  { %v975_v47 = vadd.f32 %v2594_v28, %v974_v29  ;;  %v727_v34 = vmax.f32 %v584_v3, 0.0 }
 0x19e   :  { %v976_v48 = vpop.f32.mrf.mxu1 }
 0x19f   :  { %v1227_v52 = vmax.f32 %v975_v47, 0.0 }
 0x1a0   :  { %v979_v58 = vpop.f32.mrf.mxu1  ;;  %1170 = vmatmul.mubr.bf16.gmra.mxu1 %v788_v40  ;;  %v795_v40 = vpack.c.bf16 %v725_v22, %v723_v11  ;;  %v735_v22 = vmax.f32 %v604_v12, 0.0 }
 0x1a1   :  { %v1290_v23 = vpack.c.bf16 %v1227_v52, %v1226_v51  ;;  %1177 = vmatprep.mubr.bf16.mxu1 %v791_v55  ;;  %v980_v38 = vadd.f32 %v2594_v28, %v979_v58  ;;  %v582_v52 = vadd.f32 %v2531_v15, %v2385_v60  ;;  %v586_v55 = vadd.f32 %v2539_v37, %v2385_v60 }
 0x1a2   :  { %v981_v63 = vpop.f32.mrf.mxu1 }
 0x1a3   :  { %1880 = vmatprep.mubr.bf16.mxu0 %v1290_v23  ;;  %v1228_v14 = vmax.f32 %v980_v38, 0.0  ;;  %v797_v23 = vpack.c.bf16 %v729_v46, %v727_v34  ;;  %v728_v24 = vmax.f32 %v586_v55, 0.0 }
 0x1a4   :  { %v982_v4 = vpop.f32.mrf.mxu1 }
 0x1a5   :  { %v983_v5 = vadd.f32 %v2594_v28, %v982_v4  ;;  %v726_v4 = vmax.f32 %v582_v52, 0.0 }
 0x1a6   :  { %v984_v8 = vpop.f32.mrf.mxu1 }
 0x1a7   :  { %v1229_v18 = vmax.f32 %v983_v5, 0.0  ;;  %v733_v5 = vmax.f32 %v598_v61, 0.0  ;;  %v796_v8 = vpack.c.bf16 %v728_v24, %v726_v4 }
 0x1a8   :  { %v987_v32 = vpop.f32.mrf.mxu1  ;;  %1178 = vmatmul.mubr.bf16.gmra.mxu1 %v790_v7 }
 0x1a9   :  { %v1291_v57 = vpack.c.bf16 %v1229_v18, %v1228_v14  ;;  %1185 = vmatprep.mubr.bf16.mxu1 %v793_v9  ;;  %v988_v27 = vadd.f32 %v2594_v28, %v987_v32  ;;  %v596_v9 = vadd.f32 %v2555_v25, %v2385_v60  ;;  %v608_v14 = vadd.f32 %v2585_v21, %v2383_v59 }
 0x1aa   :  { %v989_v13 = vpop.f32.mrf.mxu1  ;;  %v799_v19 = vpack.c.bf16 %v733_v5, %v731_v0  ;;  %v602_v59 = vadd.f32 %v2567_v53, %v2385_v60  ;;  %v606_v21 = vadd.f32 %v2579_v17, %v2385_v60 }
 0x1ab   :  { %1881 = vmatmul.mubr.bf16.vlgmr.msra.gmra.mxu0 %v1291_v57  ;;  %v1230_v36 = vmax.f32 %v988_v27, 0.0  ;;  %v730_v13 = vmax.f32 %v592_v39, 0.0  ;;  %v732_v11 = vmax.f32 %v596_v9, 0.0  ;;  %v737_v27 = vmax.f32 %v608_v14, 0.0 }
 0x1ac   :  { %v990_v30 = vpop.f32.mrf.mxu1 }
 0x1ad   :  { %v991_v44 = vadd.f32 %v2594_v28, %v990_v30  ;;  %v801_v3 = vpack.c.bf16 %v737_v27, %v735_v22 }
 0x1ae   :  { %v992_v35 = vpop.f32.mrf.mxu1 }
 0x1af   :  { %v1231_v29 = vmax.f32 %v991_v44, 0.0 }
 0x1b0   :  { %v995_v47 = vpop.f32.mrf.mxu1  ;;  %1186 = vmatmul.mubr.bf16.gmra.mxu1 %v792_v49  ;;  %v798_v49 = vpack.c.bf16 %v732_v11, %v730_v13 }
 0x1b1   :  { %v1292_v42 = vpack.c.bf16 %v1231_v29, %v1230_v36  ;;  %1193 = vmatprep.mubr.bf16.mxu1 %v795_v40  ;;  %v996_v54 = vadd.f32 %v2594_v28, %v995_v47  ;;  %v734_v36 = vmax.f32 %v602_v59, 0.0  ;;  %v736_v29 = vmax.f32 %v606_v21, 0.0 }
 0x1b2   :  { %v997_v48 = vpop.f32.mrf.mxu1 }
 0x1b3   :  { %1884 = vmatprep.mubr.bf16.mxu0 %v1292_v42  ;;  %v1232_v20 = vmax.f32 %v996_v54, 0.0  ;;  %v800_v43 = vpack.c.bf16 %v736_v29, %v734_v36 }
 0x1b4   :  { %v998_v26 = vpop.f32.mrf.mxu1 }
 0x1b5   :  { %v999_v51 = vadd.f32 %v2594_v28, %v998_v26 }
 0x1b6   :  { %v1000_v58 = vpop.f32.mrf.mxu1 }
 0x1b7   :  { %v1233_v41 = vmax.f32 %v999_v51, 0.0 }
 0x1b8   :  { %v1003_v63 = vpop.f32.mrf.mxu1  ;;  %1194 = vmatmul.mubr.bf16.gmra.mxu1 %v794_v50 }
 0x1b9   :  { %v1293_v38 = vpack.c.bf16 %v1233_v41, %v1232_v20  ;;  %1201 = vmatprep.mubr.bf16.mxu1 %v797_v23  ;;  %v1004_v37 = vadd.f32 %v2594_v28, %v1003_v63 }
 0x1ba   :  { %v1005_v15 = vpop.f32.mrf.mxu1 }
 0x1bb   :  { %1885 = vmatmul.mubr.bf16.gmra.mxu0 %v1293_v38  ;;  %v1234_v18 = vmax.f32 %v1004_v37, 0.0 }
 0x1bc   :  { %v1006_v7 = vpop.f32.mrf.mxu1 }
 0x1bd   :  { %v1007_v10 = vadd.f32 %v2594_v28, %v1006_v7 }
 0x1be   :  { %v1008_v16 = vpop.f32.mrf.mxu1 }
 0x1bf   :  { %v1235_v32 = vmax.f32 %v1007_v10, 0.0 }
 0x1c0   :  { %v1011_v56 = vpop.f32.mrf.mxu1  ;;  %1202 = vmatmul.mubr.bf16.gmra.mxu1 %v796_v8 }
 0x1c1   :  { %v1294_v57 = vpack.c.bf16 %v1235_v32, %v1234_v18  ;;  %1209 = vmatprep.mubr.bf16.mxu1 %v799_v19  ;;  %v1012_v25 = vadd.f32 %v2594_v28, %v1011_v56 }
 0x1c2   :  { %v1013_v62 = vpop.f32.mrf.mxu1 }
 0x1c3   :  { %1888 = vmatprep.mubr.bf16.mxu0 %v1294_v57  ;;  %v1236_v1 = vmax.f32 %v1012_v25, 0.0 }
 0x1c4   :  { %v1014_v6 = vpop.f32.mrf.mxu1 }
 0x1c5   :  { %v1015_v30 = vadd.f32 %v2594_v28, %v1014_v6 }
 0x1c6   :  { %v1016_v44 = vpop.f32.mrf.mxu1 }
 0x1c7   :  { %v1237_v31 = vmax.f32 %v1015_v30, 0.0 }
 0x1c8   :  { %v1019_v33 = vpop.f32.mrf.mxu1  ;;  %1210 = vmatmul.mubr.bf16.gmra.mxu1 %v798_v49 }
 0x1c9   :  { %v1295_v35 = vpack.c.bf16 %v1237_v31, %v1236_v1  ;;  %1217 = vmatprep.mubr.bf16.mxu1 %v801_v3  ;;  %v1020_v47 = vadd.f32 %v2594_v28, %v1019_v33 }
 0x1ca   :  { %v1021_v40 = vpop.f32.mrf.mxu1 }
 0x1cb   :  { %1889 = vmatmul.mubr.bf16.gmra.mxu0 %v1295_v35  ;;  %v1238_v60 = vmax.f32 %v1020_v47, 0.0 }
 0x1cc   :  { %v1022_v42 = vpop.f32.mrf.mxu1 }
 0x1cd   :  { %v1023_v53 = vadd.f32 %v2594_v28, %v1022_v42 }
 0x1ce   :  { %v1024_v45 = vpop.f32.mrf.mxu1 }
 0x1cf   :  { %v1239_v17 = vmax.f32 %v1023_v53, 0.0 }
 0x1d0   :  { %v1027_v34 = vpop.f32.mrf.mxu1  ;;  %1218 = vmatmul.mubr.bf16.gmra.mxu1 %v800_v43 }
 0x1d1   :  { %v1296_v46 = vpack.c.bf16 %v1239_v17, %v1238_v60  ;;  %v1028_v54 = vadd.f32 %v2594_v28, %v1027_v34 }
 0x1d2   :  { %v1029_v48 = vpop.f32.mrf.mxu1 }
 0x1d3   :  { %1892 = vmatprep.mubr.bf16.mxu0 %v1296_v46  ;;  %v1240_v52 = vmax.f32 %v1028_v54, 0.0 }
 0x1d4   :  { %v1030_v26 = vpop.f32.mrf.mxu1 }
 0x1d5   :  { %v1031_v51 = vadd.f32 %v2594_v28, %v1030_v26 }
 0x1d6   :  { %v1032_v50 = vpop.f32.mrf.mxu1 }
 0x1d7   :  { %v1241_v55 = vmax.f32 %v1031_v51, 0.0 }
 0x1d8   :  { %v1035_v58 = vpop.f32.mrf.mxu1 }
 0x1d9   :  { %v1297_v23 = vpack.c.bf16 %v1241_v55, %v1240_v52  ;;  %v1036_v61 = vadd.f32 %v2594_v28, %v1035_v58 }
 0x1da   :  { %v1037_v2 = vpop.f32.mrf.mxu1 }
 0x1db   :  { %1893 = vmatmul.mubr.bf16.gmra.mxu0 %v1297_v23  ;;  %v1242_v38 = vmax.f32 %v1036_v61, 0.0 }
 0x1dc   :  { %v1038_v20 = vpop.f32.mrf.mxu1 }
 0x1dd   :  { %v1039_v41 = vadd.f32 %v2594_v28, %v1038_v20 }
 0x1de   :  { %v1040_v63 = vpop.f32.mrf.mxu1 }
 0x1df   :  { %v1243_v4 = vmax.f32 %v1039_v41, 0.0 }
 0x1e0   :  { %v1043_v24 = vpop.f32.mrf.mxu1 }
 0x1e1   :  { %v1298_v15 = vpack.c.bf16 %v1243_v4, %v1242_v38  ;;  %v1044_v5 = vadd.f32 %v2594_v28, %v1043_v24 }
 0x1e2   :  { %v1045_v0 = vpop.f32.mrf.mxu1 }
 0x1e3   :  { %1896 = vmatprep.mubr.bf16.mxu0 %v1298_v15  ;;  %v1244_v8 = vmax.f32 %v1044_v5, 0.0 }
 0x1e4   :  { %v1046_v37 = vpop.f32.mrf.mxu1 }
 0x1e5   :  { %v1047_v7 = vadd.f32 %v2594_v28, %v1046_v37 }
 0x1e6   :  { %v1048_v10 = vpop.f32.mrf.mxu1 }
 0x1e7   :  { %v1245_v39 = vmax.f32 %v1047_v7, 0.0 }
 0x1e8   :  { %v1051_v9 = vpop.f32.mrf.mxu1 }
 0x1e9   :  { %v1299_v12 = vpack.c.bf16 %v1245_v39, %v1244_v8  ;;  %v1052_v14 = vadd.f32 %v2594_v28, %v1051_v9 }
 0x1ea   :  { %v1053_v16 = vpop.f32.mrf.mxu1 }
 0x1eb   :  { %1897 = vmatmul.mubr.bf16.gmra.mxu0 %v1299_v12  ;;  %v1246_v56 = vmax.f32 %v1052_v14, 0.0 }
 0x1ec   :  { %v1054_v18 = vpop.f32.mrf.mxu1 }
 0x1ed   :  { %v1055_v32 = vadd.f32 %v2594_v28, %v1054_v18 }
 0x1ee   :  { %v1056_v19 = vpop.f32.mrf.mxu1 }
 0x1ef   :  { %v1247_v57 = vmax.f32 %v1055_v32, 0.0 }
 0x1f0   :  { %v1059_v13 = vpop.f32.mrf.mxu1 }
 0x1f1   :  { %v1300_v11 = vpack.c.bf16 %v1247_v57, %v1246_v56  ;;  %v1060_v22 = vadd.f32 %v2594_v28, %v1059_v13 }
 0x1f2   :  { %v1061_v62 = vpop.f32.mrf.mxu1 }
 0x1f3   :  { %1900 = vmatprep.mubr.bf16.mxu0 %v1300_v11  ;;  %v1248_v30 = vmax.f32 %v1060_v22, 0.0 }
 0x1f4   :  { %v1062_v27 = vpop.f32.mrf.mxu1 }
 0x1f5   :  { %v1063_v25 = vadd.f32 %v2594_v28, %v1062_v27 }
 0x1f6   :  { %v1064_v6 = vpop.f32.mrf.mxu1 }
 0x1f7   :  { %v1249_v49 = vmax.f32 %v1063_v25, 0.0 }
 0x1f8   :  { %v1067_v59 = vpop.f32.mrf.mxu1 }
 0x1f9   :  { %v1301_v21 = vpack.c.bf16 %v1249_v49, %v1248_v30  ;;  %v1068_v1 = vadd.f32 %v2594_v28, %v1067_v59 }
 0x1fa   :  { %v1069_v44 = vpop.f32.mrf.mxu1 }
 0x1fb   :  { %1901 = vmatmul.mubr.bf16.gmra.mxu0 %v1301_v21  ;;  %v1250_v35 = vmax.f32 %v1068_v1, 0.0 }
 0x1fc   :  { %v1070_v31 = vpop.f32.mrf.mxu1 }
 0x1fd   :  { %v1071_v3 = vadd.f32 %v2594_v28, %v1070_v31 }
 0x1fe   :  { %v1072_v33 = vpop.f32.mrf.mxu1 }
 0x1ff   :  { %v1251_v36 = vmax.f32 %v1071_v3, 0.0 }
 0x200   :  { %v1075_v29 = vpop.f32.mrf.mxu1 }
 0x201   :  { %v1302_v40 = vpack.c.bf16 %v1251_v36, %v1250_v35  ;;  %v1076_v42 = vadd.f32 %v2594_v28, %v1075_v29 }
 0x202   :  { %v1077_v47 = vpop.f32.mrf.mxu1 }
 0x203   :  { %1904 = vmatprep.mubr.bf16.mxu0 %v1302_v40  ;;  %v1252_v60 = vmax.f32 %v1076_v42, 0.0 }
 0x204   :  { %v1078_v53 = vpop.f32.mrf.mxu1 }
 0x205   :  { %v1079_v43 = vadd.f32 %v2594_v28, %v1078_v53 }
 0x206   :  { %v1080_v45 = vpop.f32.mrf.mxu1 }
 0x207   :  { %v1253_v17 = vmax.f32 %v1079_v43, 0.0 }
 0x208   :  { %v1083_v34 = vpop.f32.mrf.mxu1 }
 0x209   :  { %v1303_v46 = vpack.c.bf16 %v1253_v17, %v1252_v60  ;;  %v1084_v54 = vadd.f32 %v2594_v28, %v1083_v34 }
 0x20a   :  { %v1085_v48 = vpop.f32.mrf.mxu1 }
 0x20b   :  { %1905 = vmatmul.mubr.bf16.gmra.mxu0 %v1303_v46  ;;  %v1254_v52 = vmax.f32 %v1084_v54, 0.0 }
 0x20c   :  { %v1086_v26 = vpop.f32.mrf.mxu1 }
 0x20d   :  { %v1087_v51 = vadd.f32 %v2594_v28, %v1086_v26 }
 0x20e   :  { %v1088_v50 = vpop.f32.mrf.mxu1 }
 0x20f   :  { %v1255_v55 = vmax.f32 %v1087_v51, 0.0 }
 0x210   :  { %v1091_v58 = vpop.f32.mrf.mxu1 }
 0x211   :  { %v1304_v23 = vpack.c.bf16 %v1255_v55, %v1254_v52  ;;  %v1092_v61 = vadd.f32 %v2594_v28, %v1091_v58 }
 0x212   :  { %v1093_v2 = vpop.f32.mrf.mxu1 }
 0x213   :  { %1908 = vmatprep.mubr.bf16.mxu0 %v1304_v23  ;;  %v1256_v38 = vmax.f32 %v1092_v61, 0.0 }
 0x214   :  { %v1094_v20 = vpop.f32.mrf.mxu1 }
 0x215   :  { %v1095_v41 = vadd.f32 %v2594_v28, %v1094_v20 }
 0x216   :  { %v1096_v63 = vpop.f32.mrf.mxu1 }
 0x217   :  { %v1257_v4 = vmax.f32 %v1095_v41, 0.0 }
 0x218   :  { %v1099_v24 = vpop.f32.mrf.mxu1 }
 0x219   :  { %v1305_v15 = vpack.c.bf16 %v1257_v4, %v1256_v38  ;;  %v1100_v5 = vadd.f32 %v2594_v28, %v1099_v24 }
 0x21a   :  { %v1101_v0 = vpop.f32.mrf.mxu1 }
 0x21b   :  { %1909 = vmatmul.mubr.bf16.gmra.mxu0 %v1305_v15  ;;  %v1258_v8 = vmax.f32 %v1100_v5, 0.0 }
 0x21c   :  { %v1102_v37 = vpop.f32.mrf.mxu1 }
 0x21d   :  { %v1103_v7 = vadd.f32 %v2594_v28, %v1102_v37 }
 0x21e   :  { %v1104_v10 = vpop.f32.mrf.mxu1 }
 0x21f   :  { %v1259_v39 = vmax.f32 %v1103_v7, 0.0 }
 0x220   :  { %v1107_v9 = vpop.f32.mrf.mxu1 }
 0x221   :  { %v1306_v12 = vpack.c.bf16 %v1259_v39, %v1258_v8  ;;  %v1108_v14 = vadd.f32 %v2594_v28, %v1107_v9 }
 0x222   :  { %v1109_v16 = vpop.f32.mrf.mxu1 }
 0x223   :  { %1912 = vmatprep.mubr.bf16.mxu0 %v1306_v12  ;;  %v1260_v56 = vmax.f32 %v1108_v14, 0.0 }
 0x224   :  { %v1110_v18 = vpop.f32.mrf.mxu1 }
 0x225   :  { %v1111_v32 = vadd.f32 %v2594_v28, %v1110_v18 }
 0x226   :  { %v1112_v19 = vpop.f32.mrf.mxu1 }
 0x227   :  { %v1261_v57 = vmax.f32 %v1111_v32, 0.0 }
 0x228   :  { %v1115_v13 = vpop.f32.mrf.mxu1 }
 0x229   :  { %v1307_v11 = vpack.c.bf16 %v1261_v57, %v1260_v56  ;;  %v1116_v22 = vadd.f32 %v2594_v28, %v1115_v13 }
 0x22a   :  { %v1117_v62 = vpop.f32.mrf.mxu1 }
 0x22b   :  { %1913 = vmatmul.mubr.bf16.gmra.mxu0 %v1307_v11  ;;  %v1262_v30 = vmax.f32 %v1116_v22, 0.0 }
 0x22c   :  { %v1118_v27 = vpop.f32.mrf.mxu1 }
 0x22d   :  { %v1119_v25 = vadd.f32 %v2594_v28, %v1118_v27 }
 0x22e   :  { %v1120_v6 = vpop.f32.mrf.mxu1 }
 0x22f   :  { %v1263_v49 = vmax.f32 %v1119_v25, 0.0 }
 0x230   :  { %v1123_v59 = vpop.f32.mrf.mxu1 }
 0x231   :  { %v1308_v21 = vpack.c.bf16 %v1263_v49, %v1262_v30  ;;  %v1124_v1 = vadd.f32 %v2594_v28, %v1123_v59 }
 0x232   :  { %v1125_v44 = vpop.f32.mrf.mxu1 }
 0x233   :  { %1916 = vmatprep.mubr.bf16.mxu0 %v1308_v21  ;;  %v1264_v35 = vmax.f32 %v1124_v1, 0.0  ;;  %v2695_v44 = vld [vmem:[%s2782_s6] ss:$0 sm:$0xff]  ;;  %s2005_s6 = smov [#allocation2]  }
 0x234   :  { %v1126_v31 = vpop.f32.mrf.mxu1  ;;  %s1751_s15 = sshll.u32 %s2005_s6, 4  ;;  %s1752_s15 = int_to_ptr.vmem [resolvable:$true] %s1751_s15 }
 0x235   :  { %v1127_v3 = vadd.f32 %v2594_v28, %v1126_v31  ;;  %s1982_s16 = scalar_lea.vmem %s1752_s15, 8192  ;;  %p1987_p1 = scmp.lt.s32.totalorder %s1752_s15, %s1752_s15 }
 0x236   :  { %v1128_v33 = vpop.f32.mrf.mxu1  ;;  %p1983_p0 = scmp.ne.s32.totalorder %s1752_s15, %s1982_s16  ;;  %p1988_p2 = scmp.lt.s32.totalorder %s1982_s16, %s1982_s16 }
 0x237   :  { %v1265_v36 = vmax.f32 %v1127_v3, 0.0 }
 0x238   :  { %v1131_v29 = vpop.f32.mrf.mxu1  ;;  %p1989_p3 = por %p1988_p2, %p1987_p1 }
 0x239   :  { %v1309_v40 = vpack.c.bf16 %v1265_v36, %v1264_v35  ;;  %v1132_v42 = vadd.f32 %v2594_v28, %v1131_v29 }
 0x23a   :  { %v1133_v47 = vpop.f32.mrf.mxu1  ;;  %p1990_p4 = pnand %p1989_p3, %p1983_p0 }
 0x23b   :  { %1917 = vmatmul.mubr.bf16.gmra.mxu0 %v1309_v40  ;;  %v1266_v60 = vmax.f32 %v1132_v42, 0.0 }
 0x23c   :  { %v1134_v53 = vpop.f32.mrf.mxu1 }
 0x23d   :  { %v1135_v43 = vadd.f32 %v2594_v28, %v1134_v53 }
 0x23e   :  { %v1136_v45 = vpop.f32.mrf.mxu1 }
 0x23f   :  { %v1267_v17 = vmax.f32 %v1135_v43, 0.0 }
 0x240   :  { %v1139_v34 = vpop.f32.mrf.mxu1 }
 0x241   :  { %v1310_v46 = vpack.c.bf16 %v1267_v17, %v1266_v60  ;;  %v1140_v54 = vadd.f32 %v2594_v28, %v1139_v34 }
 0x242   :  { %v1141_v48 = vpop.f32.mrf.mxu1 }
 0x243   :  { %1920 = vmatprep.mubr.bf16.mxu0 %v1310_v46  ;;  %v1268_v52 = vmax.f32 %v1140_v54, 0.0 }
 0x244   :  { %v1142_v26 = vpop.f32.mrf.mxu1 }
 0x245   :  { %v1143_v51 = vadd.f32 %v2594_v28, %v1142_v26 }
 0x246   :  { %v1144_v50 = vpop.f32.mrf.mxu1 }
 0x247   :  { %v1269_v55 = vmax.f32 %v1143_v51, 0.0 }
 0x248   :  { %v1147_v58 = vpop.f32.mrf.mxu1 }
 0x249   :  { %v1311_v23 = vpack.c.bf16 %v1269_v55, %v1268_v52  ;;  %v1148_v61 = vadd.f32 %v2594_v28, %v1147_v58 }
 0x24a   :  { %v1149_v2 = vpop.f32.mrf.mxu1 }
 0x24b   :  { %1921 = vmatmul.mubr.bf16.gmra.mxu0 %v1311_v23  ;;  %v1270_v38 = vmax.f32 %v1148_v61, 0.0 }
 0x24c   :  { %v1150_v20 = vpop.f32.mrf.mxu1 }
 0x24d   :  { %v1151_v41 = vadd.f32 %v2594_v28, %v1150_v20 }
 0x24e   :  { %v1152_v63 = vpop.f32.mrf.mxu1 }
 0x24f   :  { %v1271_v4 = vmax.f32 %v1151_v41, 0.0 }
 0x250   :  { %v1155_v24 = vpop.f32.mrf.mxu1 }
 0x251   :  { %v1312_v15 = vpack.c.bf16 %v1271_v4, %v1270_v38  ;;  %v1156_v5 = vadd.f32 %v2594_v28, %v1155_v24 }
 0x252   :  { %v1157_v0 = vpop.f32.mrf.mxu1 }
 0x253   :  { %1924 = vmatprep.mubr.bf16.mxu0 %v1312_v15  ;;  %v1272_v8 = vmax.f32 %v1156_v5, 0.0 }
 0x254   :  { %v1158_v37 = vpop.f32.mrf.mxu1 }
 0x255   :  { %v1159_v7 = vadd.f32 %v2594_v28, %v1158_v37 }
 0x256   :  { %v1160_v10 = vpop.f32.mrf.mxu1 }
 0x257   :  { %v1273_v39 = vmax.f32 %v1159_v7, 0.0 }
 0x258   :  { %v1163_v9 = vpop.f32.mrf.mxu1 }
 0x259   :  { %v1313_v12 = vpack.c.bf16 %v1273_v39, %v1272_v8  ;;  %v1164_v14 = vadd.f32 %v2594_v28, %v1163_v9 }
 0x25a   :  { %v1165_v16 = vpop.f32.mrf.mxu1 }
 0x25b   :  { %1925 = vmatmul.mubr.bf16.gmra.mxu0 %v1313_v12  ;;  %v1274_v56 = vmax.f32 %v1164_v14, 0.0 }
 0x25c   :  { %v1166_v18 = vpop.f32.mrf.mxu1 }
 0x25d   :  { %v1167_v32 = vadd.f32 %v2594_v28, %v1166_v18 }
 0x25e   :  { %v1168_v19 = vpop.f32.mrf.mxu1 }
 0x25f   :  { %v1275_v57 = vmax.f32 %v1167_v32, 0.0 }
 0x260   :  { %v1171_v13 = vpop.f32.mrf.mxu1 }
 0x261   :  { %v1314_v11 = vpack.c.bf16 %v1275_v57, %v1274_v56  ;;  %v1172_v22 = vadd.f32 %v2594_v28, %v1171_v13 }
 0x262   :  { %v1173_v62 = vpop.f32.mrf.mxu1 }
 0x263   :  { %1928 = vmatprep.mubr.bf16.mxu0 %v1314_v11  ;;  %v1276_v30 = vmax.f32 %v1172_v22, 0.0 }
 0x264   :  { %v1174_v27 = vpop.f32.mrf.mxu1 }
 0x265   :  { %v1175_v25 = vadd.f32 %v2594_v28, %v1174_v27 }
 0x266   :  { %v1176_v6 = vpop.f32.mrf.mxu1 }
 0x267   :  { %v1277_v49 = vmax.f32 %v1175_v25, 0.0 }
 0x268   :  { %v1179_v59 = vpop.f32.mrf.mxu1 }
 0x269   :  { %v1315_v21 = vpack.c.bf16 %v1277_v49, %v1276_v30  ;;  %v1180_v31 = vadd.f32 %v2594_v28, %v1179_v59 }
 0x26a   :  { %v1181_v1 = vpop.f32.mrf.mxu1 }
 0x26b   :  { %v1882_v3 = vpop.f32.mrf.mxu0  ;;  %1929 = vmatmul.mubr.bf16.gmra.mxu0 %v1315_v21  ;;  %v1278_v42 = vmax.f32 %v1180_v31, 0.0 }
 0x26c   :  { %v1436_v33 = vadd.f32 %v1882_v3, %v2695_v44  ;;  %v1182_v35 = vpop.f32.mrf.mxu1 }
 0x26d   :  { %v1183_v36 = vadd.f32 %v2594_v28, %v1182_v35  ;;  %v1427_v29 = vpop.f32.mrf.mxu0 }
 0x26e   :  { %1684 = vst [vmem:[#allocation2 + $0x10] sm:$0xff] %v1436_v33  ;;  %v1428_v40 = vadd.f32 %v2695_v44, %v1427_v29  ;;  %v1184_v47 = vpop.f32.mrf.mxu1 }
 0x26f   :  { %v1279_v53 = vmax.f32 %v1183_v36, 0.0  ;;  %v1883_v43 = vpop.f32.mrf.mxu0 }
 0x270   :  { %1682 = vst [vmem:[#allocation2] sm:$0xff] %v1428_v40  ;;  %v1439_v45 = vadd.f32 %v1883_v43, %v2695_v44  ;;  %v1187_v60 = vpop.f32.mrf.mxu1 }
 0x271   :  { %v1316_v17 = vpack.c.bf16 %v1279_v53, %v1278_v42  ;;  %v1430_v34 = vpop.f32.mrf.mxu0  ;;  %v1188_v54 = vadd.f32 %v2594_v28, %v1187_v60 }
 0x272   :  { %1685 = vst [vmem:[#allocation2 + $0x18] sm:$0xff] %v1439_v45  ;;  %v1431_v46 = vadd.f32 %v2695_v44, %v1430_v34  ;;  %v1189_v48 = vpop.f32.mrf.mxu1 }
 0x273   :  { %1932 = vmatprep.mubr.bf16.mxu0 %v1316_v17  ;;  %v1280_v52 = vmax.f32 %v1188_v54, 0.0 }
 0x274   :  { %1683 = vst [vmem:[#allocation2 + $0x8] sm:$0xff] %v1431_v46  ;;  %v1190_v26 = vpop.f32.mrf.mxu1 }
 0x275   :  { %v1191_v51 = vadd.f32 %v2594_v28, %v1190_v26 }
 0x276   :  { %v1192_v50 = vpop.f32.mrf.mxu1 }
 0x277   :  { %v1281_v55 = vmax.f32 %v1191_v51, 0.0 }
 0x278   :  { %v1195_v58 = vpop.f32.mrf.mxu1 }
 0x279   :  { %v1317_v23 = vpack.c.bf16 %v1281_v55, %v1280_v52  ;;  %v1196_v61 = vadd.f32 %v2594_v28, %v1195_v58 }
 0x27a   :  { %v1197_v2 = vpop.f32.mrf.mxu1 }
 0x27b   :  { %v1886_v20 = vpop.f32.mrf.mxu0  ;;  %1933 = vmatmul.mubr.bf16.gmra.mxu0 %v1317_v23  ;;  %v1282_v0 = vmax.f32 %v1196_v61, 0.0 }
 0x27c   :  { %v1452_v41 = vadd.f32 %v1886_v20, %v2695_v44  ;;  %v1198_v63 = vpop.f32.mrf.mxu1 }
 0x27d   :  { %v1199_v38 = vadd.f32 %v2594_v28, %v1198_v63  ;;  %v1443_v4 = vpop.f32.mrf.mxu0 }
 0x27e   :  { %1688 = vst [vmem:[#allocation2 + $0x30] sm:$0xff] %v1452_v41  ;;  %v1444_v24 = vadd.f32 %v2695_v44, %v1443_v4  ;;  %v1200_v15 = vpop.f32.mrf.mxu1 }
 0x27f   :  { %v1283_v5 = vmax.f32 %v1199_v38, 0.0  ;;  %v1887_v37 = vpop.f32.mrf.mxu0 }
 0x280   :  { %1686 = vst [vmem:[#allocation2 + $0x20] sm:$0xff] %v1444_v24  ;;  %v1455_v7 = vadd.f32 %v1887_v37, %v2695_v44  ;;  %v1203_v10 = vpop.f32.mrf.mxu1 }
 0x281   :  { %v1318_v8 = vpack.c.bf16 %v1283_v5, %v1282_v0  ;;  %v1446_v39 = vpop.f32.mrf.mxu0  ;;  %v1204_v16 = vadd.f32 %v2594_v28, %v1203_v10 }
 0x282   :  { %1689 = vst [vmem:[#allocation2 + $0x38] sm:$0xff] %v1455_v7  ;;  %v1447_v9 = vadd.f32 %v2695_v44, %v1446_v39  ;;  %v1205_v12 = vpop.f32.mrf.mxu1 }
 0x283   :  { %1936 = vmatprep.mubr.bf16.mxu0 %v1318_v8  ;;  %v1284_v19 = vmax.f32 %v1204_v16, 0.0 }
 0x284   :  { %1687 = vst [vmem:[#allocation2 + $0x28] sm:$0xff] %v1447_v9  ;;  %v1206_v14 = vpop.f32.mrf.mxu1 }
 0x285   :  { %v1207_v18 = vadd.f32 %v2594_v28, %v1206_v14 }
 0x286   :  { %v1208_v32 = vpop.f32.mrf.mxu1 }
 0x287   :  { %v1285_v56 = vmax.f32 %v1207_v18, 0.0 }
 0x288   :  { %v1211_v57 = vpop.f32.mrf.mxu1 }
 0x289   :  { %v1319_v13 = vpack.c.bf16 %v1285_v56, %v1284_v19  ;;  %v1212_v62 = vadd.f32 %v2594_v28, %v1211_v57 }
 0x28a   :  { %v1213_v11 = vpop.f32.mrf.mxu1 }
 0x28b   :  { %v1890_v22 = vpop.f32.mrf.mxu0  ;;  %1937 = vmatmul.mubr.bf16.gmra.mxu0 %v1319_v13  ;;  %v1286_v21 = vmax.f32 %v1212_v62, 0.0 }
 0x28c   :  { %v1468_v27 = vadd.f32 %v1890_v22, %v2695_v44  ;;  %v1214_v25 = vpop.f32.mrf.mxu1 }
 0x28d   :  { %v1215_v6 = vadd.f32 %v2594_v28, %v1214_v25  ;;  %v1459_v30 = vpop.f32.mrf.mxu0 }
 0x28e   :  { %1692 = vst [vmem:[#allocation2 + $0x50] sm:$0xff] %v1468_v27  ;;  %v1460_v49 = vadd.f32 %v2695_v44, %v1459_v30  ;;  %v1216_v59 = vpop.f32.mrf.mxu1 }
 0x28f   :  { %v1287_v1 = vmax.f32 %v1215_v6, 0.0  ;;  %v1891_v31 = vpop.f32.mrf.mxu0 }
 0x290   :  { %1690 = vst [vmem:[#allocation2 + $0x40] sm:$0xff] %v1460_v49  ;;  %v1471_v3 = vadd.f32 %v1891_v31, %v2695_v44  ;;  %v1219_v33 = vpop.f32.mrf.mxu1 }
 0x291   :  { %v1320_v35 = vpack.c.bf16 %v1287_v1, %v1286_v21  ;;  %v1462_v36 = vpop.f32.mrf.mxu0  ;;  %v1220_v47 = vadd.f32 %v2594_v28, %v1219_v33 }
 0x292   :  { %1693 = vst [vmem:[#allocation2 + $0x58] sm:$0xff] %v1471_v3  ;;  %v1463_v29 = vadd.f32 %v2695_v44, %v1462_v36  ;;  %v1221_v40 = vpop.f32.mrf.mxu1 }
 0x293   :  { %1940 = vmatprep.mubr.bf16.mxu0 %v1320_v35  ;;  %v1288_v45 = vmax.f32 %v1220_v47, 0.0 }
 0x294   :  { %1691 = vst [vmem:[#allocation2 + $0x48] sm:$0xff] %v1463_v29  ;;  %v1222_v42 = vpop.f32.mrf.mxu1 }
 0x295   :  { %v1223_v53 = vadd.f32 %v2594_v28, %v1222_v42 }
 0x296   :  { %v1224_v43 = vpop.f32.mrf.mxu1 }
 0x297   :  { %v1289_v60 = vmax.f32 %v1223_v53, 0.0 }
 0x299   :  { %v1321_v17 = vpack.c.bf16 %v1289_v60, %v1288_v45 }
 0x29b   :  { %v1894_v34 = vpop.f32.mrf.mxu0  ;;  %1941 = vmatmul.mubr.bf16.gmra.mxu0 %v1321_v17 }
 0x29c   :  { %v1484_v46 = vadd.f32 %v1894_v34, %v2695_v44 }
 0x29d   :  { %v1475_v48 = vpop.f32.mrf.mxu0 }
 0x29e   :  { %1696 = vst [vmem:[#allocation2 + $0x70] sm:$0xff] %v1484_v46  ;;  %v1476_v54 = vadd.f32 %v2695_v44, %v1475_v48 }
 0x29f   :  { %v1895_v26 = vpop.f32.mrf.mxu0 }
 0x2a0   :  { %1694 = vst [vmem:[#allocation2 + $0x60] sm:$0xff] %v1476_v54  ;;  %v1487_v51 = vadd.f32 %v1895_v26, %v2695_v44 }
 0x2a1   :  { %v1478_v50 = vpop.f32.mrf.mxu0 }
 0x2a2   :  { %1697 = vst [vmem:[#allocation2 + $0x78] sm:$0xff] %v1487_v51  ;;  %v1479_v28 = vadd.f32 %v2695_v44, %v1478_v50 }
 0x2a4   :  { %1695 = vst [vmem:[#allocation2 + $0x68] sm:$0xff] %v1479_v28 }
 0x2ab   :  { %v1898_v52 = vpop.f32.mrf.mxu0 }
 0x2ac   :  { %v1500_v55 = vadd.f32 %v1898_v52, %v2695_v44 }
 0x2ad   :  { %v1491_v58 = vpop.f32.mrf.mxu0 }
 0x2ae   :  { %1700 = vst [vmem:[#allocation2 + $0x90] sm:$0xff] %v1500_v55  ;;  %v1492_v23 = vadd.f32 %v2695_v44, %v1491_v58 }
 0x2af   :  { %v1899_v2 = vpop.f32.mrf.mxu0 }
 0x2b0   :  { %1698 = vst [vmem:[#allocation2 + $0x80] sm:$0xff] %v1492_v23  ;;  %v1503_v61 = vadd.f32 %v1899_v2, %v2695_v44 }
 0x2b1   :  { %v1494_v20 = vpop.f32.mrf.mxu0 }
 0x2b2   :  { %1701 = vst [vmem:[#allocation2 + $0x98] sm:$0xff] %v1503_v61  ;;  %v1495_v41 = vadd.f32 %v2695_v44, %v1494_v20 }
 0x2b4   :  { %1699 = vst [vmem:[#allocation2 + $0x88] sm:$0xff] %v1495_v41 }
 0x2bb   :  { %v1902_v63 = vpop.f32.mrf.mxu0 }
 0x2bc   :  { %v1516_v38 = vadd.f32 %v1902_v63, %v2695_v44 }
 0x2bd   :  { %v1507_v4 = vpop.f32.mrf.mxu0 }
 0x2be   :  { %1704 = vst [vmem:[#allocation2 + $0xb0] sm:$0xff] %v1516_v38  ;;  %v1508_v24 = vadd.f32 %v2695_v44, %v1507_v4 }
 0x2bf   :  { %v1903_v15 = vpop.f32.mrf.mxu0 }
 0x2c0   :  { %1702 = vst [vmem:[#allocation2 + $0xa0] sm:$0xff] %v1508_v24  ;;  %v1519_v0 = vadd.f32 %v1903_v15, %v2695_v44 }
 0x2c1   :  { %v1510_v5 = vpop.f32.mrf.mxu0 }
 0x2c2   :  { %1705 = vst [vmem:[#allocation2 + $0xb8] sm:$0xff] %v1519_v0  ;;  %v1511_v37 = vadd.f32 %v2695_v44, %v1510_v5 }
 0x2c4   :  { %1703 = vst [vmem:[#allocation2 + $0xa8] sm:$0xff] %v1511_v37 }
 0x2cb   :  { %v1906_v7 = vpop.f32.mrf.mxu0 }
 0x2cc   :  { %v1532_v10 = vadd.f32 %v1906_v7, %v2695_v44 }
 0x2cd   :  { %v1523_v8 = vpop.f32.mrf.mxu0 }
 0x2ce   :  { %1708 = vst [vmem:[#allocation2 + $0xd0] sm:$0xff] %v1532_v10  ;;  %v1524_v39 = vadd.f32 %v2695_v44, %v1523_v8 }
 0x2cf   :  { %v1907_v9 = vpop.f32.mrf.mxu0 }
 0x2d0   :  { %1706 = vst [vmem:[#allocation2 + $0xc0] sm:$0xff] %v1524_v39  ;;  %v1535_v12 = vadd.f32 %v1907_v9, %v2695_v44 }
 0x2d1   :  { %v1526_v16 = vpop.f32.mrf.mxu0 }
 0x2d2   :  { %1709 = vst [vmem:[#allocation2 + $0xd8] sm:$0xff] %v1535_v12  ;;  %v1527_v14 = vadd.f32 %v2695_v44, %v1526_v16 }
 0x2d4   :  { %1707 = vst [vmem:[#allocation2 + $0xc8] sm:$0xff] %v1527_v14 }
 0x2db   :  { %v1910_v18 = vpop.f32.mrf.mxu0 }
 0x2dc   :  { %v1548_v32 = vadd.f32 %v1910_v18, %v2695_v44 }
 0x2dd   :  { %v1539_v19 = vpop.f32.mrf.mxu0 }
 0x2de   :  { %1712 = vst [vmem:[#allocation2 + $0xf0] sm:$0xff] %v1548_v32  ;;  %v1540_v56 = vadd.f32 %v2695_v44, %v1539_v19 }
 0x2df   :  { %v1911_v57 = vpop.f32.mrf.mxu0 }
 0x2e0   :  { %1710 = vst [vmem:[#allocation2 + $0xe0] sm:$0xff] %v1540_v56  ;;  %v1551_v13 = vadd.f32 %v1911_v57, %v2695_v44 }
 0x2e1   :  { %v1542_v11 = vpop.f32.mrf.mxu0 }
 0x2e2   :  { %1713 = vst [vmem:[#allocation2 + $0xf8] sm:$0xff] %v1551_v13  ;;  %v1543_v62 = vadd.f32 %v2695_v44, %v1542_v11 }
 0x2e4   :  { %1711 = vst [vmem:[#allocation2 + $0xe8] sm:$0xff] %v1543_v62 }
 0x2eb   :  { %v1914_v22 = vpop.f32.mrf.mxu0 }
 0x2ec   :  { %v1564_v27 = vadd.f32 %v1914_v22, %v2695_v44 }
 0x2ed   :  { %v1555_v25 = vpop.f32.mrf.mxu0 }
 0x2ee   :  { %1716 = vst [vmem:[#allocation2 + $0x110] sm:$0xff] %v1564_v27  ;;  %v1556_v6 = vadd.f32 %v2695_v44, %v1555_v25 }
 0x2ef   :  { %v1915_v30 = vpop.f32.mrf.mxu0 }
 0x2f0   :  { %1714 = vst [vmem:[#allocation2 + $0x100] sm:$0xff] %v1556_v6  ;;  %v1567_v49 = vadd.f32 %v1915_v30, %v2695_v44 }
 0x2f1   :  { %v1558_v59 = vpop.f32.mrf.mxu0 }
 0x2f2   :  { %1717 = vst [vmem:[#allocation2 + $0x118] sm:$0xff] %v1567_v49  ;;  %v1559_v21 = vadd.f32 %v2695_v44, %v1558_v59 }
 0x2f4   :  { %1715 = vst [vmem:[#allocation2 + $0x108] sm:$0xff] %v1559_v21 }
 0x2fb   :  { %v1918_v1 = vpop.f32.mrf.mxu0 }
 0x2fc   :  { %v1580_v31 = vadd.f32 %v1918_v1, %v2695_v44 }
 0x2fd   :  { %v1571_v3 = vpop.f32.mrf.mxu0 }
 0x2fe   :  { %1720 = vst [vmem:[#allocation2 + $0x130] sm:$0xff] %v1580_v31  ;;  %v1572_v33 = vadd.f32 %v2695_v44, %v1571_v3 }
 0x2ff   :  { %v1919_v35 = vpop.f32.mrf.mxu0 }
 0x300   :  { %1718 = vst [vmem:[#allocation2 + $0x120] sm:$0xff] %v1572_v33  ;;  %v1583_v36 = vadd.f32 %v1919_v35, %v2695_v44 }
 0x301   :  { %v1574_v29 = vpop.f32.mrf.mxu0 }
 0x302   :  { %1721 = vst [vmem:[#allocation2 + $0x138] sm:$0xff] %v1583_v36  ;;  %v1575_v40 = vadd.f32 %v2695_v44, %v1574_v29 }
 0x304   :  { %1719 = vst [vmem:[#allocation2 + $0x128] sm:$0xff] %v1575_v40 }
 0x30b   :  { %v1922_v47 = vpop.f32.mrf.mxu0 }
 0x30c   :  { %v1596_v42 = vadd.f32 %v1922_v47, %v2695_v44 }
 0x30d   :  { %v1587_v53 = vpop.f32.mrf.mxu0 }
 0x30e   :  { %1724 = vst [vmem:[#allocation2 + $0x150] sm:$0xff] %v1596_v42  ;;  %v1588_v43 = vadd.f32 %v2695_v44, %v1587_v53 }
 0x30f   :  { %v1923_v45 = vpop.f32.mrf.mxu0 }
 0x310   :  { %1722 = vst [vmem:[#allocation2 + $0x140] sm:$0xff] %v1588_v43  ;;  %v1599_v60 = vadd.f32 %v1923_v45, %v2695_v44 }
 0x311   :  { %v1590_v17 = vpop.f32.mrf.mxu0 }
 0x312   :  { %1725 = vst [vmem:[#allocation2 + $0x158] sm:$0xff] %v1599_v60  ;;  %v1591_v34 = vadd.f32 %v2695_v44, %v1590_v17 }
 0x314   :  { %1723 = vst [vmem:[#allocation2 + $0x148] sm:$0xff] %v1591_v34 }
 0x31b   :  { %v1926_v46 = vpop.f32.mrf.mxu0 }
 0x31c   :  { %v1612_v48 = vadd.f32 %v1926_v46, %v2695_v44 }
 0x31d   :  { %v1603_v54 = vpop.f32.mrf.mxu0 }
 0x31e   :  { %1728 = vst [vmem:[#allocation2 + $0x170] sm:$0xff] %v1612_v48  ;;  %v1604_v26 = vadd.f32 %v2695_v44, %v1603_v54 }
 0x31f   :  { %v1927_v51 = vpop.f32.mrf.mxu0 }
 0x320   :  { %1726 = vst [vmem:[#allocation2 + $0x160] sm:$0xff] %v1604_v26  ;;  %v1615_v50 = vadd.f32 %v1927_v51, %v2695_v44 }
 0x321   :  { %v1606_v28 = vpop.f32.mrf.mxu0 }
 0x322   :  { %1729 = vst [vmem:[#allocation2 + $0x178] sm:$0xff] %v1615_v50  ;;  %v1607_v52 = vadd.f32 %v2695_v44, %v1606_v28 }
 0x324   :  { %1727 = vst [vmem:[#allocation2 + $0x168] sm:$0xff] %v1607_v52 }
 0x32b   :  { %v1930_v55 = vpop.f32.mrf.mxu0 }
 0x32c   :  { %v1628_v58 = vadd.f32 %v1930_v55, %v2695_v44 }
 0x32d   :  { %v1619_v23 = vpop.f32.mrf.mxu0 }
 0x32e   :  { %1732 = vst [vmem:[#allocation2 + $0x190] sm:$0xff] %v1628_v58  ;;  %v1620_v2 = vadd.f32 %v2695_v44, %v1619_v23 }
 0x32f   :  { %v1931_v61 = vpop.f32.mrf.mxu0 }
 0x330   :  { %1730 = vst [vmem:[#allocation2 + $0x180] sm:$0xff] %v1620_v2  ;;  %v1631_v20 = vadd.f32 %v1931_v61, %v2695_v44 }
 0x331   :  { %v1622_v41 = vpop.f32.mrf.mxu0 }
 0x332   :  { %1733 = vst [vmem:[#allocation2 + $0x198] sm:$0xff] %v1631_v20  ;;  %v1623_v63 = vadd.f32 %v2695_v44, %v1622_v41 }
 0x334   :  { %1731 = vst [vmem:[#allocation2 + $0x188] sm:$0xff] %v1623_v63 }
 0x33b   :  { %v1934_v38 = vpop.f32.mrf.mxu0 }
 0x33c   :  { %v1644_v4 = vadd.f32 %v1934_v38, %v2695_v44 }
 0x33d   :  { %v1635_v24 = vpop.f32.mrf.mxu0 }
 0x33e   :  { %1736 = vst [vmem:[#allocation2 + $0x1b0] sm:$0xff] %v1644_v4  ;;  %v1636_v15 = vadd.f32 %v2695_v44, %v1635_v24 }
 0x33f   :  { %v1935_v0 = vpop.f32.mrf.mxu0 }
 0x340   :  { %1734 = vst [vmem:[#allocation2 + $0x1a0] sm:$0xff] %v1636_v15  ;;  %v1647_v5 = vadd.f32 %v1935_v0, %v2695_v44 }
 0x341   :  { %v1638_v37 = vpop.f32.mrf.mxu0 }
 0x342   :  { %1737 = vst [vmem:[#allocation2 + $0x1b8] sm:$0xff] %v1647_v5  ;;  %v1639_v7 = vadd.f32 %v2695_v44, %v1638_v37 }
 0x344   :  { %1735 = vst [vmem:[#allocation2 + $0x1a8] sm:$0xff] %v1639_v7 }
 0x34b   :  { %v1938_v10 = vpop.f32.mrf.mxu0 }
 0x34c   :  { %v1660_v8 = vadd.f32 %v1938_v10, %v2695_v44 }
 0x34d   :  { %v1651_v39 = vpop.f32.mrf.mxu0 }
 0x34e   :  { %1740 = vst [vmem:[#allocation2 + $0x1d0] sm:$0xff] %v1660_v8  ;;  %v1652_v9 = vadd.f32 %v2695_v44, %v1651_v39 }
 0x34f   :  { %v1939_v12 = vpop.f32.mrf.mxu0 }
 0x350   :  { %1738 = vst [vmem:[#allocation2 + $0x1c0] sm:$0xff] %v1652_v9  ;;  %v1663_v16 = vadd.f32 %v1939_v12, %v2695_v44 }
 0x351   :  { %v1654_v14 = vpop.f32.mrf.mxu0 }
 0x352   :  { %1741 = vst [vmem:[#allocation2 + $0x1d8] sm:$0xff] %v1663_v16  ;;  %v1655_v18 = vadd.f32 %v2695_v44, %v1654_v14 }
 0x354   :  { %1739 = vst [vmem:[#allocation2 + $0x1c8] sm:$0xff] %v1655_v18 }
 0x35b   :  { %v1942_v32 = vpop.f32.mrf.mxu0 }
 0x35c   :  { %v1676_v19 = vadd.f32 %v1942_v32, %v2695_v44 }
 0x35d   :  { %v1667_v56 = vpop.f32.mrf.mxu0 }
 0x35e   :  { %1744 = vst [vmem:[#allocation2 + $0x1f0] sm:$0xff] %v1676_v19  ;;  %v1668_v57 = vadd.f32 %v2695_v44, %v1667_v56 }
 0x35f   :  { %v1943_v13 = vpop.f32.mrf.mxu0 }
 0x360   :  { %1742 = vst [vmem:[#allocation2 + $0x1e0] sm:$0xff] %v1668_v57  ;;  %v1679_v11 = vadd.f32 %v1943_v13, %v2695_v44 }
 0x361   :  { %v1670_v62 = vpop.f32.mrf.mxu0 }
 0x362   :  { %1745 = vst [vmem:[#allocation2 + $0x1f8] sm:$0xff] %v1679_v11  ;;  %v1671_v22 = vadd.f32 %v2695_v44, %v1670_v62 }
 0x364   :  { %1743 = vst [vmem:[#allocation2 + $0x1e8] sm:$0xff] %v1671_v22 }
 0x365   :  { %1993 = shalt.err (!%p1990_p4)
}
 0x366   :  { %s2006_s17 = smov 128   ;;  %s2007_s18 = smov 8  }
 0x367   :  { %1757 = dma.vmem_to_hbm [thread:$0]  %s1752_s15, 8192, %s2783_s7, [#allocation3], %s2006_s17, %s2006_s17, %s2007_s18  }
 0x368   :  { %2002 = dma.done.wait [#allocation3], 8192  }
 0x369   :  { %2003 = vsyncadd [#allocation3], 4294959104 }
 0x36a   :  { %1761 = vsyncpa [#allocation3], 1 }

</bundles_post_ra>
